<compile_context>
chip_gen: v6e
topology: v6e:2x2x1
jax: 0.10.0
libtpu: 0.0.40
codegen_flags: <defaults>
</compile_context>

<pallas_src>
import functools
import math

import jax
import jax.numpy as jnp
import numpy as np
from jax.experimental import pallas as pl
from jax.experimental.pallas import tpu as pltpu


def _round_up(x, m):
    return ((x + m - 1) // m) * m


def _vmem_budget():
    """Generation-aware (working budget, scoped vmem limit) in bytes."""
    cap = None
    try:
        cap = pltpu.get_tpu_info().vmem_capacity_bytes
    except Exception:
        cap = None
    if cap is None:
        cap = 64 * 1024 * 1024            # conservative (v7x-sized) fallback
    if cap >= 100 * 1024 * 1024:          # v5e / v6e: 128 MiB per core
        return 64 * 1024 * 1024, 100 * 1024 * 1024
    return 40 * 1024 * 1024, 56 * 1024 * 1024   # v7x-class: 64 MiB per core


# --------------------------------------------------------------------------- #
# Kernel
# --------------------------------------------------------------------------- #
def _kan_kernel(x_ref, gridt_ref, invdl_ref, invdr_ref, w_ref, bias_ref,
                o_ref, act_ref, *, f_real, f_blk, grid_size, spline_order,
                rows, use_layernorm, use_bias, eps):
    K = grid_size + spline_order
    G = grid_size + 2 * spline_order + 1
    act_dtype = act_ref.dtype

    # The fused activation [silu(x) | B_0(x) | ... | B_{K-1}(x)] is built once
    # per row tile (at unit-tile index j == 0) and reused for the remaining
    # unit tiles.  This relies on the unit axis (grid axis 1) being the
    # innermost grid axis, i.e. j == 0 runs first for every row tile i.
    @pl.when(pl.program_id(1) == 0)
    def _build_activations():
        need_mask = (f_real != f_blk) and use_layernorm
        if need_mask:
            lane = jax.lax.broadcasted_iota(jnp.int32, (1, f_blk), 1)
            feat_mask = lane < f_real

        n_chunks = act_ref.shape[0] // rows

        def chunk(c, carry):
            r0 = pl.multiple_of(c * rows, rows)
            rs = pl.ds(r0, rows)
            x = x_ref[rs, :].astype(jnp.float32)
            if use_layernorm:
                # TODO(synk): torch nn.LayerNorm(normalized_shape=None) is
                # ill-formed; we implement the intended LN over the last dim
                # (no affine params, eps=1e-5), statistics over the real F
                # features only (padding lanes are masked out).
                mu = jnp.sum(x, axis=-1, keepdims=True) * (1.0 / f_real)
                xc = x - mu
                if need_mask:
                    xc = jnp.where(feat_mask, xc, 0.0)
                var = jnp.sum(xc * xc, axis=-1, keepdims=True) * (1.0 / f_real)
                x = xc * jax.lax.rsqrt(var + eps)

            # base path block: silu(x), cast at store time into the operand-
            # dtype scratch (no separate full-tile cast before the matmul).
            act_ref[rs, 0:f_blk] = (x * jax.nn.sigmoid(x)).astype(act_dtype)

            # spline path: Cox-de Boor recursion with precomputed reciprocal
            # knot spacings (multiplies only, no divides).  Knot/reciprocal
            # rows are read as small (1, F_blk) slices to keep vreg pressure
            # low; finished bases go straight into the scratch.
            bases = []
            for i in range(G - 1):
                gi = gridt_ref[i:i + 1, :]
                gi1 = gridt_ref[i + 1:i + 2, :]
                bases.append(jnp.where((x >= gi) & (x < gi1), 1.0, 0.0))
            for k in range(1, spline_order + 1):
                nb = []
                for i in range(G - 1 - k):
                    left = (x - gridt_ref[i:i + 1, :]) * invdl_ref[k - 1, i:i + 1, :]
                    right = ((gridt_ref[i + k + 1:i + k + 2, :] - x)
                             * invdr_ref[k - 1, i:i + 1, :])
                    nb.append(left * bases[i] + right * bases[i + 1])
                bases = nb
            for j in range(K):
                act_ref[rs, (j + 1) * f_blk:(j + 2) * f_blk] = (
                    bases[j].astype(act_dtype))
            return carry

        jax.lax.fori_loop(0, n_chunks, chunk, 0)

    # Single wide-contraction matmul: (tm, (K+1)*F_blk) @ ((K+1)*F_blk, tn),
    # f32 accumulation; operands already in the weight dtype.
    out = jnp.dot(act_ref[...], w_ref[...], preferred_element_type=jnp.float32)
    if use_bias:
        out = out + bias_ref[...]                      # (1, tn) broadcast
    # dropout(p=0.0) / eval mode is the identity — not materialized.
    o_ref[...] = out.astype(o_ref.dtype)


# --------------------------------------------------------------------------- #
# One-time parameter preparation (kernel layout, padding, reciprocal tables)
# --------------------------------------------------------------------------- #
def prepare_kernel_params(params, *, grid_size=3, spline_order=3,
                          param_dtype=jnp.float32):
    base_weight = jnp.asarray(params["base_weight"], jnp.float32)      # (U, F)
    spline_weight = jnp.asarray(params["spline_weight"], jnp.float32)  # (U, F*K)
    base_bias = jnp.asarray(params["base_bias"], jnp.float32)          # (U,)
    grid = jnp.asarray(params["grid"], jnp.float32)                    # (1, F, G)

    units, F = base_weight.shape
    K = grid_size + spline_order
    G = grid_size + 2 * spline_order + 1
    F_blk = _round_up(F, 128)          # 128-aligned lane offset for every block
    C = (K + 1) * F_blk

    budget_bytes, vmem_limit = _vmem_budget()
    w_bytes = jnp.dtype(param_dtype).itemsize

    # Weight residency: keep the whole stacked weight in VMEM (one DMA for the
    # whole kernel) whenever its double-buffered footprint fits ~half of the
    # working budget; otherwise tile the unit axis (prefer 512/256-wide tiles).
    units_pad = _round_up(units, 128)
    if 2 * C * units_pad * w_bytes <= budget_bytes // 2:
        tn = units_pad
    else:
        tn = 512
        while tn > 128 and 2 * C * tn * w_bytes > budget_bytes // 3:
            tn //= 2
        units_pad = _round_up(units, tn)

    # fused weight layout: row f                 -> base_weight[:, f]   (silu)
    #                      row (j+1)*F_blk + f   -> spline_weight[:, f*K + j]
    # (padding rows / columns are zero)
    wb_t = base_weight.T                                               # (F, U)
    ws_kfu = jnp.transpose(spline_weight.reshape(units, F, K), (2, 1, 0))
    blocks = jnp.concatenate([wb_t[None], ws_kfu], axis=0)             # (K+1,F,U)
    blocks = jnp.pad(blocks, ((0, 0), (0, F_blk - F), (0, units_pad - units)))
    w_stack = blocks.reshape(C, units_pad).astype(param_dtype)
    bias_p = jnp.pad(base_bias, (0, units_pad - units)).reshape(1, units_pad)

    gridt = jnp.pad(jnp.transpose(grid[0], (1, 0)), ((0, 0), (0, F_blk - F)))
    gridt = gridt.astype(jnp.float32)                                  # (G, F_blk)

    # x-independent Cox-de Boor denominators -> reciprocals (0 where unused or
    # in padding lanes), so the in-kernel recursion is multiply/add only.
    g_np = np.asarray(gridt)
    inv_dl = np.zeros((spline_order, G, F_blk), np.float32)
    inv_dr = np.zeros((spline_order, G, F_blk), np.float32)
    for k in range(1, spline_order + 1):
        for i in range(G - 1 - k):
            dl = g_np[i + k] - g_np[i]
            dr = g_np[i + k + 1] - g_np[i + 1]
            inv_dl[k - 1, i] = np.divide(1.0, dl, out=np.zeros_like(dl),
                                         where=dl != 0)
            inv_dr[k - 1, i] = np.divide(1.0, dr, out=np.zeros_like(dr),
                                         where=dr != 0)

    return dict(w=w_stack, bias=bias_p, gridt=gridt,
                inv_dl=jnp.asarray(inv_dl), inv_dr=jnp.asarray(inv_dr),
                units=units, units_pad=units_pad, tn=tn,
                in_features=F, f_blk=F_blk, C=C, K=K, G=G,
                grid_size=grid_size, spline_order=spline_order,
                budget_bytes=budget_bytes, vmem_limit=vmem_limit)


# --------------------------------------------------------------------------- #
# Row-tile selection from the generation-aware VMEM budget
# --------------------------------------------------------------------------- #
def _choose_tm(M, f_blk, C, tn, n_u, G, p, x_bytes, act_bytes, w_bytes,
               out_bytes, budget_bytes):
    # double-buffered constant operands: weight tile, knots, reciprocals, bias
    fixed = 2 * (C * tn * w_bytes + (2 * p + 1) * G * f_blk * 4 + tn * 4)
    fixed += 1 << 20   # slack for the bounded per-chunk recursion temporaries
    # per-row working set: operand-dtype activation scratch (single-buffered),
    # f32 matmul result, LN/silu temps, double-buffered x / out pipeline blocks.
    per_row = act_bytes * C + 4 * tn + 8 * f_blk
    per_row += 2 * x_bytes * f_blk + 2 * out_bytes * tn
    tm = (budget_bytes - fixed) // max(per_row, 1)
    tm = int(max(32, min(tm, 1024)))
    tm = (tm // 32) * 32
    if M <= tm:
        return _round_up(max(M, 1), 32)
    if n_u == 1 and M >= 4 * 256:
        # Weight is VMEM-resident, so smaller row tiles cost no extra weight
        # DMA: keep >= 4 row tiles for v7x megacore sharding / pipeline slack.
        # (When n_u > 1 the weight is re-streamed once per row tile, so tm is
        # kept as large as the budget allows instead.)
        tm = min(tm, max(256, _round_up(-(-M // 4), 32)))
    return max(32, (tm // 32) * 32)


# --------------------------------------------------------------------------- #
# Forward wrapper
# --------------------------------------------------------------------------- #
def kan_linear(x, kparams, *, use_layernorm=True, use_bias=True, eps=1e-5):
    B, S, F = x.shape
    assert F == kparams["in_features"]
    F_blk, C = kparams["f_blk"], kparams["C"]
    G = kparams["G"]
    units, units_pad, tn = kparams["units"], kparams["units_pad"], kparams["tn"]
    grid_size, spline_order = kparams["grid_size"], kparams["spline_order"]
    w, bias, gridt = kparams["w"], kparams["bias"], kparams["gridt"]
    inv_dl, inv_dr = kparams["inv_dl"], kparams["inv_dr"]

    M = B * S
    xm = x.reshape(M, F)
    x_bytes = xm.dtype.itemsize
    w_bytes = w.dtype.itemsize
    out_bytes = x_bytes
    n_u = units_pad // tn

    tm = _choose_tm(M, F_blk, C, tn, n_u, G, spline_order, x_bytes, w_bytes,
                    w_bytes, out_bytes, kparams["budget_bytes"])
    M_pad = _round_up(M, tm)
    xm = jnp.pad(xm, ((0, M_pad - M), (0, F_blk - F)))
    n_m = M_pad // tm

    # Row sub-chunk for the bounded-live-range basis build: fit the ~G live
    # f32 (rows, F_blk) temporaries into vregs, but never below the native
    # sublane packing of the narrowest dtype touched (bf16 needs 16 rows).
    min_item = min(x_bytes, w_bytes)
    base_rows = 8 if min_item >= 4 else 16
    rows = max(base_rows, min(32, (32 * 128) // F_blk))
    rows = min(rows, tm)

    kern = functools.partial(
        _kan_kernel, f_real=F, f_blk=F_blk, grid_size=grid_size,
        spline_order=spline_order, rows=rows, use_layernorm=use_layernorm,
        use_bias=use_bias, eps=eps)

    w_streams = 1 if n_u == 1 else n_m      # weight DMA'd once iff resident
    cost = pl.CostEstimate(
        flops=int(2 * M_pad * C * units_pad),
        transcendentals=int(M_pad * (F_blk + 1)),      # sigmoid + rsqrt
        bytes_accessed=int(xm.size * x_bytes
                           + w_streams * w.size * w_bytes
                           + M_pad * units_pad * out_bytes
                           + (inv_dl.size + inv_dr.size + gridt.size
                              + bias.size) * 4))

    out = pl.pallas_call(
        kern,
        out_shape=jax.ShapeDtypeStruct((M_pad, units_pad), x.dtype),
        grid_spec=pltpu.PrefetchScalarGridSpec(
            num_scalar_prefetch=0,
            # NOTE: the unit axis j must stay the innermost grid axis — the
            # fused-activation scratch is built at j == 0 and reused by the
            # remaining unit tiles of the same row tile.
            grid=(n_m, n_u),
            in_specs=[
                pl.BlockSpec((tm, F_blk), lambda i, j: (i, 0)),
                pl.BlockSpec((G, F_blk), lambda i, j: (0, 0)),
                pl.BlockSpec((spline_order, G, F_blk), lambda i, j: (0, 0, 0)),
                pl.BlockSpec((spline_order, G, F_blk), lambda i, j: (0, 0, 0)),
                pl.BlockSpec((C, tn), lambda i, j: (0, j)),
                pl.BlockSpec((1, tn), lambda i, j: (0, j)),
            ],
            out_specs=pl.BlockSpec((tm, tn), lambda i, j: (i, j)),
            # operand-dtype scratch (bf16 when the weights are bf16)
            scratch_shapes=[pltpu.VMEM((tm, C), w.dtype)],
        ),
        compiler_params=pltpu.CompilerParams(
            dimension_semantics=("parallel", "arbitrary"),
            vmem_limit_bytes=int(kparams["vmem_limit"])),
        cost_estimate=cost,
    )(xm, gridt, inv_dl, inv_dr, w, bias)

    return out[:M, :units].reshape(B, S, units)


# --------------------------------------------------------------------------- #
# Torch-layout parameter init (mirrors the lazy init in KANLinear.forward)
# --------------------------------------------------------------------------- #
def init_params(key, in_features, units, *, grid_size=3, spline_order=3,
                grid_range=(-1.0, 1.0)):
    k1, k2 = jax.random.split(key)
    K = grid_size + spline_order
    # kaiming_uniform_(a=sqrt(5)) -> bound = 1/sqrt(fan_in)
    bound_b = 1.0 / math.sqrt(in_features)
    bound_s = 1.0 / math.sqrt(in_features * K)
    base_weight = jax.random.uniform(k1, (units, in_features), jnp.float32,
                                     -bound_b, bound_b)
    spline_weight = jax.random.uniform(k2, (units, in_features * K), jnp.float32,
                                       -bound_s, bound_s)
    base_bias = jnp.zeros((units,), jnp.float32)
    h = (grid_range[1] - grid_range[0]) / grid_size
    G = grid_size + 2 * spline_order + 1
    gl = jnp.linspace(-spline_order * h + grid_range[0],
                      (grid_size + spline_order) * h + grid_range[0], G)
    grid = jnp.tile(gl[None, None, :], (1, in_features, 1))   # (1, F, G)
    return dict(base_weight=base_weight, spline_weight=spline_weight,
                base_bias=base_bias, grid=grid)


def kan_ref(x, params, *, grid_size=3, spline_order=3, eps=1e-5):
    """Pure-JAX reference mirroring the torch forward."""
    wb, ws = params["base_weight"], params["spline_weight"]
    bias, grid = params["base_bias"], params["grid"]
    B, S, F = x.shape
    mu = x.mean(-1, keepdims=True)
    var = ((x - mu) ** 2).mean(-1, keepdims=True)
    xn = (x - mu) / jnp.sqrt(var + eps)
    base = jax.nn.silu(xn) @ wb.T + bias
    G = grid.shape[-1]
    ge = jnp.broadcast_to(grid[0], (B, S, F, G))
    xe = xn[..., None]
    bases = ((xe >= ge[..., :-1]) & (xe < ge[..., 1:])).astype(jnp.float32)
    for k in range(1, spline_order + 1):
        left = (xe - ge[..., :-(k + 1)]) / (ge[..., k:-1] - ge[..., :-(k + 1)])
        right = (ge[..., k + 1:] - xe) / (ge[..., k + 1:] - ge[..., 1:-k])
        bases = left * bases[..., :-1] + right * bases[..., 1:]
    K = grid_size + spline_order
    spline = bases.reshape(B, S, F * K) @ ws.T
    return base + spline


if __name__ == "__main__":
    key = jax.random.PRNGKey(0)
    kx, kp = jax.random.split(key)
    B, S, F, units = 2, 8, 32, 32
    x = jax.random.normal(kx, (B, S, F), jnp.float32)
    params = init_params(kp, F, units)
    ref = kan_ref(x, params)

    # f32 operands: strict check against the pure-JAX reference.
    kparams_f32 = prepare_kernel_params(params, param_dtype=jnp.float32)
    out = jax.block_until_ready(kan_linear(x, kparams_f32))
    assert out.shape == (B, S, units)
    if not np.allclose(np.asarray(out), np.asarray(ref), atol=1e-4, rtol=1e-4):
        err = float(np.max(np.abs(np.asarray(out) - np.asarray(ref))))
        raise SystemExit(f"f32 mismatch vs reference: max err {err:e}")

    # bf16 operands with f32 accumulation (halves HBM/VMEM traffic).  Looser
    # tolerance covers bf16 operand quantization; near knot boundaries the
    # bf16-quantized x may land in the adjacent order-0 interval, but spline
    # continuity keeps the resulting error within the bf16 noise floor.
    kparams_bf16 = prepare_kernel_params(params, param_dtype=jnp.bfloat16)
    x_bf = x.astype(jnp.bfloat16)
    out_bf = jax.block_until_ready(kan_linear(x_bf, kparams_bf16))
    ref_bf = kan_ref(x_bf.astype(jnp.float32), params)
    o = np.asarray(out_bf, np.float32)
    r = np.asarray(ref_bf, np.float32)
    if not np.allclose(o, r, atol=5e-2, rtol=5e-2):
        err = float(np.max(np.abs(o - r)))
        raise SystemExit(f"bf16 mismatch vs reference: max err {err:e}")

    print("KERNEL_OK")
</pallas_src>

<mosaic_0001>
module attributes {stable_mosaic.version = 11 : i64} {
  func.func @_kan_kernel(%arg0: i32, %arg1: i32, %arg2: memref<32x128xf32, #tpu.memory_space<vmem>>, %arg3: memref<10x128xf32, #tpu.memory_space<vmem>>, %arg4: memref<3x10x128xf32, #tpu.memory_space<vmem>>, %arg5: memref<3x10x128xf32, #tpu.memory_space<vmem>>, %arg6: memref<896x128xf32, #tpu.memory_space<vmem>>, %arg7: memref<1x128xf32, #tpu.memory_space<vmem>>, %arg8: memref<32x128xf32, #tpu.memory_space<vmem>>, %arg9: memref<32x896xf32, #tpu.memory_space<vmem>>) attributes {dimension_semantics = [#tpu.dimension_semantics<parallel>, #tpu.dimension_semantics<arbitrary>], iteration_bounds = array<i64: 1, 1>, scalar_prefetch = 0 : i64, scratch_operands = 1 : i64, tpu.core_type = #tpu.core_type<tc>, window_params = [{transform_indices = @transform_0, window_bounds = array<i64: 32, 128>}, {pipeline_mode = #tpu.pipeline_mode<synchronous>, transform_indices = @transform_1, window_bounds = array<i64: 10, 128>}, {pipeline_mode = #tpu.pipeline_mode<synchronous>, transform_indices = @transform_2, window_bounds = array<i64: 3, 10, 128>}, {pipeline_mode = #tpu.pipeline_mode<synchronous>, transform_indices = @transform_3, window_bounds = array<i64: 3, 10, 128>}, {transform_indices = @transform_4, window_bounds = array<i64: 896, 128>}, {transform_indices = @transform_5, window_bounds = array<i64: 1, 128>}, {transform_indices = @transform_6, window_bounds = array<i64: 32, 128>}]} {
    %c0_i32 = arith.constant 0 : i32
    %0 = arith.cmpi eq, %arg1, %c0_i32 : i32
    %1 = arith.extui %0 : i1 to i32
    %c0_i32_0 = arith.constant 0 : i32
    %2 = arith.cmpi ne, %1, %c0_i32_0 : i32
    scf.if %2 {
      %10 = tpu.iota {dimensions = array<i32: 1>} : vector<1x128xi32>
      %c32_i32 = arith.constant 32 : i32
      %11 = vector.broadcast %c32_i32 : i32 to vector<1x128xi32>
      %12 = arith.cmpi slt, %10, %11 : vector<1x128xi32>
      %c0_i32_8 = arith.constant 0 : i32
      %c32_i32_9 = arith.constant 32 : i32
      %13 = arith.muli %c0_i32_8, %c32_i32_9 : i32
      %14 = tpu.assume_multiple %13, 32 : i32
      %15 = arith.index_cast %14 : i32 to index
      %c0_10 = arith.constant 0 : index
      %16 = vector.load %arg2[%15, %c0_10] : memref<32x128xf32, #tpu.memory_space<vmem>>, vector<32x128xf32>
      %cst_11 = arith.constant dense<0.000000e+00> : vector<32xf32>
      %17 = vector.multi_reduction <add>, %16, %cst_11 [1] : vector<32x128xf32> to vector<32xf32>
      %18 = vector.shape_cast %17 : vector<32xf32> to vector<32x1xf32>
      %cst_12 = arith.constant 3.125000e-02 : f32
      %19 = vector.broadcast %cst_12 : f32 to vector<32x1xf32>
      %20 = arith.mulf %18, %19 : vector<32x1xf32>
      %21 = vector.broadcast %20 : vector<32x1xf32> to vector<32x128xf32>
      %22 = arith.subf %16, %21 : vector<32x128xf32>
      %cst_13 = arith.constant 0.000000e+00 : f32
      %23 = vector.shape_cast %12 : vector<1x128xi1> to vector<1x128xi1>
      %24 = vector.broadcast %23 : vector<1x128xi1> to vector<32x128xi1>
      %25 = vector.broadcast %cst_13 : f32 to vector<32x128xf32>
      %26 = arith.select %24, %22, %25 : vector<32x128xi1>, vector<32x128xf32>
      %27 = arith.mulf %26, %26 : vector<32x128xf32>
      %cst_14 = arith.constant dense<0.000000e+00> : vector<32xf32>
      %28 = vector.multi_reduction <add>, %27, %cst_14 [1] : vector<32x128xf32> to vector<32xf32>
      %29 = vector.shape_cast %28 : vector<32xf32> to vector<32x1xf32>
      %cst_15 = arith.constant 3.125000e-02 : f32
      %30 = vector.broadcast %cst_15 : f32 to vector<32x1xf32>
      %31 = arith.mulf %29, %30 : vector<32x1xf32>
      %cst_16 = arith.constant 9.99999974E-6 : f32
      %32 = vector.broadcast %cst_16 : f32 to vector<32x1xf32>
      %33 = arith.addf %31, %32 : vector<32x1xf32>
      %34 = math.rsqrt %33 : vector<32x1xf32>
      %35 = vector.broadcast %34 : vector<32x1xf32> to vector<32x128xf32>
      %36 = arith.mulf %26, %35 : vector<32x128xf32>
      %37 = arith.negf %36 : vector<32x128xf32>
      %38 = math.exp %37 : vector<32x128xf32>
      %cst_17 = arith.constant 1.000000e+00 : f32
      %39 = vector.broadcast %cst_17 : f32 to vector<32x128xf32>
      %40 = arith.addf %39, %38 : vector<32x128xf32>
      %41 = arith.divf %39, %40 : vector<32x128xf32>
      %42 = arith.mulf %36, %41 : vector<32x128xf32>
      %43 = arith.index_cast %14 : i32 to index
      %c0_18 = arith.constant 0 : index
      %44 = vector.load %arg9[%43, %c0_18] : memref<32x896xf32, #tpu.memory_space<vmem>>, vector<32x128xf32>
      tpu.vector_store %arg9[%43, %c0_18], %42 {strides = array<i32>} : memref<32x896xf32, #tpu.memory_space<vmem>>, vector<32x128xf32>,
      %c0_19 = arith.constant 0 : index
      %c0_20 = arith.constant 0 : index
      %45 = vector.load %arg3[%c0_19, %c0_20] : memref<10x128xf32, #tpu.memory_space<vmem>>, vector<1x128xf32>
      %c1 = arith.constant 1 : index
      %c0_21 = arith.constant 0 : index
      %46 = vector.load %arg3[%c1, %c0_21] : memref<10x128xf32, #tpu.memory_space<vmem>>, vector<1x128xf32>
      %47 = vector.broadcast %45 : vector<1x128xf32> to vector<32x128xf32>
      %48 = arith.cmpf oge, %36, %47 : vector<32x128xf32>
      %49 = vector.broadcast %46 : vector<1x128xf32> to vector<32x128xf32>
      %50 = arith.cmpf olt, %36, %49 : vector<32x128xf32>
      %51 = arith.andi %48, %50 : vector<32x128xi1>
      %cst_22 = arith.constant 1.000000e+00 : f32
      %cst_23 = arith.constant 0.000000e+00 : f32
      %52 = vector.broadcast %cst_22 : f32 to vector<32x128xf32>
      %53 = vector.broadcast %cst_23 : f32 to vector<32x128xf32>
      %54 = arith.select %51, %52, %53 : vector<32x128xi1>, vector<32x128xf32>
      %c1_24 = arith.constant 1 : index
      %c0_25 = arith.constant 0 : index
      %55 = vector.load %arg3[%c1_24, %c0_25] : memref<10x128xf32, #tpu.memory_space<vmem>>, vector<1x128xf32>
      %c2 = arith.constant 2 : index
      %c0_26 = arith.constant 0 : index
      %56 = vector.load %arg3[%c2, %c0_26] : memref<10x128xf32, #tpu.memory_space<vmem>>, vector<1x128xf32>
      %57 = vector.broadcast %55 : vector<1x128xf32> to vector<32x128xf32>
      %58 = arith.cmpf oge, %36, %57 : vector<32x128xf32>
      %59 = vector.broadcast %56 : vector<1x128xf32> to vector<32x128xf32>
      %60 = arith.cmpf olt, %36, %59 : vector<32x128xf32>
      %61 = arith.andi %58, %60 : vector<32x128xi1>
      %cst_27 = arith.constant 1.000000e+00 : f32
      %cst_28 = arith.constant 0.000000e+00 : f32
      %62 = vector.broadcast %cst_27 : f32 to vector<32x128xf32>
      %63 = vector.broadcast %cst_28 : f32 to vector<32x128xf32>
      %64 = arith.select %61, %62, %63 : vector<32x128xi1>, vector<32x128xf32>
      %c2_29 = arith.constant 2 : index
      %c0_30 = arith.constant 0 : index
      %65 = vector.load %arg3[%c2_29, %c0_30] : memref<10x128xf32, #tpu.memory_space<vmem>>, vector<1x128xf32>
      %c3 = arith.constant 3 : index
      %c0_31 = arith.constant 0 : index
      %66 = vector.load %arg3[%c3, %c0_31] : memref<10x128xf32, #tpu.memory_space<vmem>>, vector<1x128xf32>
      %67 = vector.broadcast %65 : vector<1x128xf32> to vector<32x128xf32>
      %68 = arith.cmpf oge, %36, %67 : vector<32x128xf32>
      %69 = vector.broadcast %66 : vector<1x128xf32> to vector<32x128xf32>
      %70 = arith.cmpf olt, %36, %69 : vector<32x128xf32>
      %71 = arith.andi %68, %70 : vector<32x128xi1>
      %cst_32 = arith.constant 1.000000e+00 : f32
      %cst_33 = arith.constant 0.000000e+00 : f32
      %72 = vector.broadcast %cst_32 : f32 to vector<32x128xf32>
      %73 = vector.broadcast %cst_33 : f32 to vector<32x128xf32>
      %74 = arith.select %71, %72, %73 : vector<32x128xi1>, vector<32x128xf32>
      %c3_34 = arith.constant 3 : index
      %c0_35 = arith.constant 0 : index
      %75 = vector.load %arg3[%c3_34, %c0_35] : memref<10x128xf32, #tpu.memory_space<vmem>>, vector<1x128xf32>
      %c4 = arith.constant 4 : index
      %c0_36 = arith.constant 0 : index
      %76 = vector.load %arg3[%c4, %c0_36] : memref<10x128xf32, #tpu.memory_space<vmem>>, vector<1x128xf32>
      %77 = vector.broadcast %75 : vector<1x128xf32> to vector<32x128xf32>
      %78 = arith.cmpf oge, %36, %77 : vector<32x128xf32>
      %79 = vector.broadcast %76 : vector<1x128xf32> to vector<32x128xf32>
      %80 = arith.cmpf olt, %36, %79 : vector<32x128xf32>
      %81 = arith.andi %78, %80 : vector<32x128xi1>
      %cst_37 = arith.constant 1.000000e+00 : f32
      %cst_38 = arith.constant 0.000000e+00 : f32
      %82 = vector.broadcast %cst_37 : f32 to vector<32x128xf32>
      %83 = vector.broadcast %cst_38 : f32 to vector<32x128xf32>
      %84 = arith.select %81, %82, %83 : vector<32x128xi1>, vector<32x128xf32>
      %c4_39 = arith.constant 4 : index
      %c0_40 = arith.constant 0 : index
      %85 = vector.load %arg3[%c4_39, %c0_40] : memref<10x128xf32, #tpu.memory_space<vmem>>, vector<1x128xf32>
      %c5 = arith.constant 5 : index
      %c0_41 = arith.constant 0 : index
      %86 = vector.load %arg3[%c5, %c0_41] : memref<10x128xf32, #tpu.memory_space<vmem>>, vector<1x128xf32>
      %87 = vector.broadcast %85 : vector<1x128xf32> to vector<32x128xf32>
      %88 = arith.cmpf oge, %36, %87 : vector<32x128xf32>
      %89 = vector.broadcast %86 : vector<1x128xf32> to vector<32x128xf32>
      %90 = arith.cmpf olt, %36, %89 : vector<32x128xf32>
      %91 = arith.andi %88, %90 : vector<32x128xi1>
      %cst_42 = arith.constant 1.000000e+00 : f32
      %cst_43 = arith.constant 0.000000e+00 : f32
      %92 = vector.broadcast %cst_42 : f32 to vector<32x128xf32>
      %93 = vector.broadcast %cst_43 : f32 to vector<32x128xf32>
      %94 = arith.select %91, %92, %93 : vector<32x128xi1>, vector<32x128xf32>
      %c5_44 = arith.constant 5 : index
      %c0_45 = arith.constant 0 : index
      %95 = vector.load %arg3[%c5_44, %c0_45] : memref<10x128xf32, #tpu.memory_space<vmem>>, vector<1x128xf32>
      %c6 = arith.constant 6 : index
      %c0_46 = arith.constant 0 : index
      %96 = vector.load %arg3[%c6, %c0_46] : memref<10x128xf32, #tpu.memory_space<vmem>>, vector<1x128xf32>
      %97 = vector.broadcast %95 : vector<1x128xf32> to vector<32x128xf32>
      %98 = arith.cmpf oge, %36, %97 : vector<32x128xf32>
      %99 = vector.broadcast %96 : vector<1x128xf32> to vector<32x128xf32>
      %100 = arith.cmpf olt, %36, %99 : vector<32x128xf32>
      %101 = arith.andi %98, %100 : vector<32x128xi1>
      %cst_47 = arith.constant 1.000000e+00 : f32
      %cst_48 = arith.constant 0.000000e+00 : f32
      %102 = vector.broadcast %cst_47 : f32 to vector<32x128xf32>
      %103 = vector.broadcast %cst_48 : f32 to vector<32x128xf32>
      %104 = arith.select %101, %102, %103 : vector<32x128xi1>, vector<32x128xf32>
      %c6_49 = arith.constant 6 : index
      %c0_50 = arith.constant 0 : index
      %105 = vector.load %arg3[%c6_49, %c0_50] : memref<10x128xf32, #tpu.memory_space<vmem>>, vector<1x128xf32>
      %c7 = arith.constant 7 : index
      %c0_51 = arith.constant 0 : index
      %106 = vector.load %arg3[%c7, %c0_51] : memref<10x128xf32, #tpu.memory_space<vmem>>, vector<1x128xf32>
      %107 = vector.broadcast %105 : vector<1x128xf32> to vector<32x128xf32>
      %108 = arith.cmpf oge, %36, %107 : vector<32x128xf32>
      %109 = vector.broadcast %106 : vector<1x128xf32> to vector<32x128xf32>
      %110 = arith.cmpf olt, %36, %109 : vector<32x128xf32>
      %111 = arith.andi %108, %110 : vector<32x128xi1>
      %cst_52 = arith.constant 1.000000e+00 : f32
      %cst_53 = arith.constant 0.000000e+00 : f32
      %112 = vector.broadcast %cst_52 : f32 to vector<32x128xf32>
      %113 = vector.broadcast %cst_53 : f32 to vector<32x128xf32>
      %114 = arith.select %111, %112, %113 : vector<32x128xi1>, vector<32x128xf32>
      %c7_54 = arith.constant 7 : index
      %c0_55 = arith.constant 0 : index
      %115 = vector.load %arg3[%c7_54, %c0_55] : memref<10x128xf32, #tpu.memory_space<vmem>>, vector<1x128xf32>
      %c8 = arith.constant 8 : index
      %c0_56 = arith.constant 0 : index
      %116 = vector.load %arg3[%c8, %c0_56] : memref<10x128xf32, #tpu.memory_space<vmem>>, vector<1x128xf32>
      %117 = vector.broadcast %115 : vector<1x128xf32> to vector<32x128xf32>
      %118 = arith.cmpf oge, %36, %117 : vector<32x128xf32>
      %119 = vector.broadcast %116 : vector<1x128xf32> to vector<32x128xf32>
      %120 = arith.cmpf olt, %36, %119 : vector<32x128xf32>
      %121 = arith.andi %118, %120 : vector<32x128xi1>
      %cst_57 = arith.constant 1.000000e+00 : f32
      %cst_58 = arith.constant 0.000000e+00 : f32
      %122 = vector.broadcast %cst_57 : f32 to vector<32x128xf32>
      %123 = vector.broadcast %cst_58 : f32 to vector<32x128xf32>
      %124 = arith.select %121, %122, %123 : vector<32x128xi1>, vector<32x128xf32>
      %c8_59 = arith.constant 8 : index
      %c0_60 = arith.constant 0 : index
      %125 = vector.load %arg3[%c8_59, %c0_60] : memref<10x128xf32, #tpu.memory_space<vmem>>, vector<1x128xf32>
      %c9 = arith.constant 9 : index
      %c0_61 = arith.constant 0 : index
      %126 = vector.load %arg3[%c9, %c0_61] : memref<10x128xf32, #tpu.memory_space<vmem>>, vector<1x128xf32>
      %127 = vector.broadcast %125 : vector<1x128xf32> to vector<32x128xf32>
      %128 = arith.cmpf oge, %36, %127 : vector<32x128xf32>
      %129 = vector.broadcast %126 : vector<1x128xf32> to vector<32x128xf32>
      %130 = arith.cmpf olt, %36, %129 : vector<32x128xf32>
      %131 = arith.andi %128, %130 : vector<32x128xi1>
      %cst_62 = arith.constant 1.000000e+00 : f32
      %cst_63 = arith.constant 0.000000e+00 : f32
      %132 = vector.broadcast %cst_62 : f32 to vector<32x128xf32>
      %133 = vector.broadcast %cst_63 : f32 to vector<32x128xf32>
      %134 = arith.select %131, %132, %133 : vector<32x128xi1>, vector<32x128xf32>
      %c0_64 = arith.constant 0 : index
      %c0_65 = arith.constant 0 : index
      %135 = vector.load %arg3[%c0_64, %c0_65] : memref<10x128xf32, #tpu.memory_space<vmem>>, vector<1x128xf32>
      %136 = vector.broadcast %135 : vector<1x128xf32> to vector<32x128xf32>
      %137 = arith.subf %36, %136 : vector<32x128xf32>
      %c0_66 = arith.constant 0 : index
      %c0_67 = arith.constant 0 : index
      %c0_68 = arith.constant 0 : index
      %138 = vector.load %arg4[%c0_66, %c0_67, %c0_68] : memref<3x10x128xf32, #tpu.memory_space<vmem>>, vector<1x1x128xf32>
      %139 = vector.shape_cast %138 : vector<1x1x128xf32> to vector<1x128xf32>
      %140 = vector.broadcast %139 : vector<1x128xf32> to vector<32x128xf32>
      %141 = arith.mulf %137, %140 : vector<32x128xf32>
      %c2_69 = arith.constant 2 : index
      %c0_70 = arith.constant 0 : index
      %142 = vector.load %arg3[%c2_69, %c0_70] : memref<10x128xf32, #tpu.memory_space<vmem>>, vector<1x128xf32>
      %143 = vector.broadcast %142 : vector<1x128xf32> to vector<32x128xf32>
      %144 = arith.subf %143, %36 : vector<32x128xf32>
      %c0_71 = arith.constant 0 : index
      %c0_72 = arith.constant 0 : index
      %c0_73 = arith.constant 0 : index
      %145 = vector.load %arg5[%c0_71, %c0_72, %c0_73] : memref<3x10x128xf32, #tpu.memory_space<vmem>>, vector<1x1x128xf32>
      %146 = vector.shape_cast %145 : vector<1x1x128xf32> to vector<1x128xf32>
      %147 = vector.broadcast %146 : vector<1x128xf32> to vector<32x128xf32>
      %148 = arith.mulf %144, %147 : vector<32x128xf32>
      %149 = arith.mulf %141, %54 : vector<32x128xf32>
      %150 = arith.mulf %148, %64 : vector<32x128xf32>
      %151 = arith.addf %149, %150 : vector<32x128xf32>
      %c1_74 = arith.constant 1 : index
      %c0_75 = arith.constant 0 : index
      %152 = vector.load %arg3[%c1_74, %c0_75] : memref<10x128xf32, #tpu.memory_space<vmem>>, vector<1x128xf32>
      %153 = vector.broadcast %152 : vector<1x128xf32> to vector<32x128xf32>
      %154 = arith.subf %36, %153 : vector<32x128xf32>
      %c0_76 = arith.constant 0 : index
      %c1_77 = arith.constant 1 : index
      %c0_78 = arith.constant 0 : index
      %155 = vector.load %arg4[%c0_76, %c1_77, %c0_78] : memref<3x10x128xf32, #tpu.memory_space<vmem>>, vector<1x1x128xf32>
      %156 = vector.shape_cast %155 : vector<1x1x128xf32> to vector<1x128xf32>
      %157 = vector.broadcast %156 : vector<1x128xf32> to vector<32x128xf32>
      %158 = arith.mulf %154, %157 : vector<32x128xf32>
      %c3_79 = arith.constant 3 : index
      %c0_80 = arith.constant 0 : index
      %159 = vector.load %arg3[%c3_79, %c0_80] : memref<10x128xf32, #tpu.memory_space<vmem>>, vector<1x128xf32>
      %160 = vector.broadcast %159 : vector<1x128xf32> to vector<32x128xf32>
      %161 = arith.subf %160, %36 : vector<32x128xf32>
      %c0_81 = arith.constant 0 : index
      %c1_82 = arith.constant 1 : index
      %c0_83 = arith.constant 0 : index
      %162 = vector.load %arg5[%c0_81, %c1_82, %c0_83] : memref<3x10x128xf32, #tpu.memory_space<vmem>>, vector<1x1x128xf32>
      %163 = vector.shape_cast %162 : vector<1x1x128xf32> to vector<1x128xf32>
      %164 = vector.broadcast %163 : vector<1x128xf32> to vector<32x128xf32>
      %165 = arith.mulf %161, %164 : vector<32x128xf32>
      %166 = arith.mulf %158, %64 : vector<32x128xf32>
      %167 = arith.mulf %165, %74 : vector<32x128xf32>
      %168 = arith.addf %166, %167 : vector<32x128xf32>
      %c2_84 = arith.constant 2 : index
      %c0_85 = arith.constant 0 : index
      %169 = vector.load %arg3[%c2_84, %c0_85] : memref<10x128xf32, #tpu.memory_space<vmem>>, vector<1x128xf32>
      %170 = vector.broadcast %169 : vector<1x128xf32> to vector<32x128xf32>
      %171 = arith.subf %36, %170 : vector<32x128xf32>
      %c0_86 = arith.constant 0 : index
      %c2_87 = arith.constant 2 : index
      %c0_88 = arith.constant 0 : index
      %172 = vector.load %arg4[%c0_86, %c2_87, %c0_88] : memref<3x10x128xf32, #tpu.memory_space<vmem>>, vector<1x1x128xf32>
      %173 = vector.shape_cast %172 : vector<1x1x128xf32> to vector<1x128xf32>
      %174 = vector.broadcast %173 : vector<1x128xf32> to vector<32x128xf32>
      %175 = arith.mulf %171, %174 : vector<32x128xf32>
      %c4_89 = arith.constant 4 : index
      %c0_90 = arith.constant 0 : index
      %176 = vector.load %arg3[%c4_89, %c0_90] : memref<10x128xf32, #tpu.memory_space<vmem>>, vector<1x128xf32>
      %177 = vector.broadcast %176 : vector<1x128xf32> to vector<32x128xf32>
      %178 = arith.subf %177, %36 : vector<32x128xf32>
      %c0_91 = arith.constant 0 : index
      %c2_92 = arith.constant 2 : index
      %c0_93 = arith.constant 0 : index
      %179 = vector.load %arg5[%c0_91, %c2_92, %c0_93] : memref<3x10x128xf32, #tpu.memory_space<vmem>>, vector<1x1x128xf32>
      %180 = vector.shape_cast %179 : vector<1x1x128xf32> to vector<1x128xf32>
      %181 = vector.broadcast %180 : vector<1x128xf32> to vector<32x128xf32>
      %182 = arith.mulf %178, %181 : vector<32x128xf32>
      %183 = arith.mulf %175, %74 : vector<32x128xf32>
      %184 = arith.mulf %182, %84 : vector<32x128xf32>
      %185 = arith.addf %183, %184 : vector<32x128xf32>
      %c3_94 = arith.constant 3 : index
      %c0_95 = arith.constant 0 : index
      %186 = vector.load %arg3[%c3_94, %c0_95] : memref<10x128xf32, #tpu.memory_space<vmem>>, vector<1x128xf32>
      %187 = vector.broadcast %186 : vector<1x128xf32> to vector<32x128xf32>
      %188 = arith.subf %36, %187 : vector<32x128xf32>
      %c0_96 = arith.constant 0 : index
      %c3_97 = arith.constant 3 : index
      %c0_98 = arith.constant 0 : index
      %189 = vector.load %arg4[%c0_96, %c3_97, %c0_98] : memref<3x10x128xf32, #tpu.memory_space<vmem>>, vector<1x1x128xf32>
      %190 = vector.shape_cast %189 : vector<1x1x128xf32> to vector<1x128xf32>
      %191 = vector.broadcast %190 : vector<1x128xf32> to vector<32x128xf32>
      %192 = arith.mulf %188, %191 : vector<32x128xf32>
      %c5_99 = arith.constant 5 : index
      %c0_100 = arith.constant 0 : index
      %193 = vector.load %arg3[%c5_99, %c0_100] : memref<10x128xf32, #tpu.memory_space<vmem>>, vector<1x128xf32>
      %194 = vector.broadcast %193 : vector<1x128xf32> to vector<32x128xf32>
      %195 = arith.subf %194, %36 : vector<32x128xf32>
      %c0_101 = arith.constant 0 : index
      %c3_102 = arith.constant 3 : index
      %c0_103 = arith.constant 0 : index
      %196 = vector.load %arg5[%c0_101, %c3_102, %c0_103] : memref<3x10x128xf32, #tpu.memory_space<vmem>>, vector<1x1x128xf32>
      %197 = vector.shape_cast %196 : vector<1x1x128xf32> to vector<1x128xf32>
      %198 = vector.broadcast %197 : vector<1x128xf32> to vector<32x128xf32>
      %199 = arith.mulf %195, %198 : vector<32x128xf32>
      %200 = arith.mulf %192, %84 : vector<32x128xf32>
      %201 = arith.mulf %199, %94 : vector<32x128xf32>
      %202 = arith.addf %200, %201 : vector<32x128xf32>
      %c4_104 = arith.constant 4 : index
      %c0_105 = arith.constant 0 : index
      %203 = vector.load %arg3[%c4_104, %c0_105] : memref<10x128xf32, #tpu.memory_space<vmem>>, vector<1x128xf32>
      %204 = vector.broadcast %203 : vector<1x128xf32> to vector<32x128xf32>
      %205 = arith.subf %36, %204 : vector<32x128xf32>
      %c0_106 = arith.constant 0 : index
      %c4_107 = arith.constant 4 : index
      %c0_108 = arith.constant 0 : index
      %206 = vector.load %arg4[%c0_106, %c4_107, %c0_108] : memref<3x10x128xf32, #tpu.memory_space<vmem>>, vector<1x1x128xf32>
      %207 = vector.shape_cast %206 : vector<1x1x128xf32> to vector<1x128xf32>
      %208 = vector.broadcast %207 : vector<1x128xf32> to vector<32x128xf32>
      %209 = arith.mulf %205, %208 : vector<32x128xf32>
      %c6_109 = arith.constant 6 : index
      %c0_110 = arith.constant 0 : index
      %210 = vector.load %arg3[%c6_109, %c0_110] : memref<10x128xf32, #tpu.memory_space<vmem>>, vector<1x128xf32>
      %211 = vector.broadcast %210 : vector<1x128xf32> to vector<32x128xf32>
      %212 = arith.subf %211, %36 : vector<32x128xf32>
      %c0_111 = arith.constant 0 : index
      %c4_112 = arith.constant 4 : index
      %c0_113 = arith.constant 0 : index
      %213 = vector.load %arg5[%c0_111, %c4_112, %c0_113] : memref<3x10x128xf32, #tpu.memory_space<vmem>>, vector<1x1x128xf32>
      %214 = vector.shape_cast %213 : vector<1x1x128xf32> to vector<1x128xf32>
      %215 = vector.broadcast %214 : vector<1x128xf32> to vector<32x128xf32>
      %216 = arith.mulf %212, %215 : vector<32x128xf32>
      %217 = arith.mulf %209, %94 : vector<32x128xf32>
      %218 = arith.mulf %216, %104 : vector<32x128xf32>
      %219 = arith.addf %217, %218 : vector<32x128xf32>
      %c5_114 = arith.constant 5 : index
      %c0_115 = arith.constant 0 : index
      %220 = vector.load %arg3[%c5_114, %c0_115] : memref<10x128xf32, #tpu.memory_space<vmem>>, vector<1x128xf32>
      %221 = vector.broadcast %220 : vector<1x128xf32> to vector<32x128xf32>
      %222 = arith.subf %36, %221 : vector<32x128xf32>
      %c0_116 = arith.constant 0 : index
      %c5_117 = arith.constant 5 : index
      %c0_118 = arith.constant 0 : index
      %223 = vector.load %arg4[%c0_116, %c5_117, %c0_118] : memref<3x10x128xf32, #tpu.memory_space<vmem>>, vector<1x1x128xf32>
      %224 = vector.shape_cast %223 : vector<1x1x128xf32> to vector<1x128xf32>
      %225 = vector.broadcast %224 : vector<1x128xf32> to vector<32x128xf32>
      %226 = arith.mulf %222, %225 : vector<32x128xf32>
      %c7_119 = arith.constant 7 : index
      %c0_120 = arith.constant 0 : index
      %227 = vector.load %arg3[%c7_119, %c0_120] : memref<10x128xf32, #tpu.memory_space<vmem>>, vector<1x128xf32>
      %228 = vector.broadcast %227 : vector<1x128xf32> to vector<32x128xf32>
      %229 = arith.subf %228, %36 : vector<32x128xf32>
      %c0_121 = arith.constant 0 : index
      %c5_122 = arith.constant 5 : index
      %c0_123 = arith.constant 0 : index
      %230 = vector.load %arg5[%c0_121, %c5_122, %c0_123] : memref<3x10x128xf32, #tpu.memory_space<vmem>>, vector<1x1x128xf32>
      %231 = vector.shape_cast %230 : vector<1x1x128xf32> to vector<1x128xf32>
      %232 = vector.broadcast %231 : vector<1x128xf32> to vector<32x128xf32>
      %233 = arith.mulf %229, %232 : vector<32x128xf32>
      %234 = arith.mulf %226, %104 : vector<32x128xf32>
      %235 = arith.mulf %233, %114 : vector<32x128xf32>
      %236 = arith.addf %234, %235 : vector<32x128xf32>
      %c6_124 = arith.constant 6 : index
      %c0_125 = arith.constant 0 : index
      %237 = vector.load %arg3[%c6_124, %c0_125] : memref<10x128xf32, #tpu.memory_space<vmem>>, vector<1x128xf32>
      %238 = vector.broadcast %237 : vector<1x128xf32> to vector<32x128xf32>
      %239 = arith.subf %36, %238 : vector<32x128xf32>
      %c0_126 = arith.constant 0 : index
      %c6_127 = arith.constant 6 : index
      %c0_128 = arith.constant 0 : index
      %240 = vector.load %arg4[%c0_126, %c6_127, %c0_128] : memref<3x10x128xf32, #tpu.memory_space<vmem>>, vector<1x1x128xf32>
      %241 = vector.shape_cast %240 : vector<1x1x128xf32> to vector<1x128xf32>
      %242 = vector.broadcast %241 : vector<1x128xf32> to vector<32x128xf32>
      %243 = arith.mulf %239, %242 : vector<32x128xf32>
      %c8_129 = arith.constant 8 : index
      %c0_130 = arith.constant 0 : index
      %244 = vector.load %arg3[%c8_129, %c0_130] : memref<10x128xf32, #tpu.memory_space<vmem>>, vector<1x128xf32>
      %245 = vector.broadcast %244 : vector<1x128xf32> to vector<32x128xf32>
      %246 = arith.subf %245, %36 : vector<32x128xf32>
      %c0_131 = arith.constant 0 : index
      %c6_132 = arith.constant 6 : index
      %c0_133 = arith.constant 0 : index
      %247 = vector.load %arg5[%c0_131, %c6_132, %c0_133] : memref<3x10x128xf32, #tpu.memory_space<vmem>>, vector<1x1x128xf32>
      %248 = vector.shape_cast %247 : vector<1x1x128xf32> to vector<1x128xf32>
      %249 = vector.broadcast %248 : vector<1x128xf32> to vector<32x128xf32>
      %250 = arith.mulf %246, %249 : vector<32x128xf32>
      %251 = arith.mulf %243, %114 : vector<32x128xf32>
      %252 = arith.mulf %250, %124 : vector<32x128xf32>
      %253 = arith.addf %251, %252 : vector<32x128xf32>
      %c7_134 = arith.constant 7 : index
      %c0_135 = arith.constant 0 : index
      %254 = vector.load %arg3[%c7_134, %c0_135] : memref<10x128xf32, #tpu.memory_space<vmem>>, vector<1x128xf32>
      %255 = vector.broadcast %254 : vector<1x128xf32> to vector<32x128xf32>
      %256 = arith.subf %36, %255 : vector<32x128xf32>
      %c0_136 = arith.constant 0 : index
      %c7_137 = arith.constant 7 : index
      %c0_138 = arith.constant 0 : index
      %257 = vector.load %arg4[%c0_136, %c7_137, %c0_138] : memref<3x10x128xf32, #tpu.memory_space<vmem>>, vector<1x1x128xf32>
      %258 = vector.shape_cast %257 : vector<1x1x128xf32> to vector<1x128xf32>
      %259 = vector.broadcast %258 : vector<1x128xf32> to vector<32x128xf32>
      %260 = arith.mulf %256, %259 : vector<32x128xf32>
      %c9_139 = arith.constant 9 : index
      %c0_140 = arith.constant 0 : index
      %261 = vector.load %arg3[%c9_139, %c0_140] : memref<10x128xf32, #tpu.memory_space<vmem>>, vector<1x128xf32>
      %262 = vector.broadcast %261 : vector<1x128xf32> to vector<32x128xf32>
      %263 = arith.subf %262, %36 : vector<32x128xf32>
      %c0_141 = arith.constant 0 : index
      %c7_142 = arith.constant 7 : index
      %c0_143 = arith.constant 0 : index
      %264 = vector.load %arg5[%c0_141, %c7_142, %c0_143] : memref<3x10x128xf32, #tpu.memory_space<vmem>>, vector<1x1x128xf32>
      %265 = vector.shape_cast %264 : vector<1x1x128xf32> to vector<1x128xf32>
      %266 = vector.broadcast %265 : vector<1x128xf32> to vector<32x128xf32>
      %267 = arith.mulf %263, %266 : vector<32x128xf32>
      %268 = arith.mulf %260, %124 : vector<32x128xf32>
      %269 = arith.mulf %267, %134 : vector<32x128xf32>
      %270 = arith.addf %268, %269 : vector<32x128xf32>
      %c0_144 = arith.constant 0 : index
      %c0_145 = arith.constant 0 : index
      %271 = vector.load %arg3[%c0_144, %c0_145] : memref<10x128xf32, #tpu.memory_space<vmem>>, vector<1x128xf32>
      %272 = vector.broadcast %271 : vector<1x128xf32> to vector<32x128xf32>
      %273 = arith.subf %36, %272 : vector<32x128xf32>
      %c1_146 = arith.constant 1 : index
      %c0_147 = arith.constant 0 : index
      %c0_148 = arith.constant 0 : index
      %274 = vector.load %arg4[%c1_146, %c0_147, %c0_148] : memref<3x10x128xf32, #tpu.memory_space<vmem>>, vector<1x1x128xf32>
      %275 = vector.shape_cast %274 : vector<1x1x128xf32> to vector<1x128xf32>
      %276 = vector.broadcast %275 : vector<1x128xf32> to vector<32x128xf32>
      %277 = arith.mulf %273, %276 : vector<32x128xf32>
      %c3_149 = arith.constant 3 : index
      %c0_150 = arith.constant 0 : index
      %278 = vector.load %arg3[%c3_149, %c0_150] : memref<10x128xf32, #tpu.memory_space<vmem>>, vector<1x128xf32>
      %279 = vector.broadcast %278 : vector<1x128xf32> to vector<32x128xf32>
      %280 = arith.subf %279, %36 : vector<32x128xf32>
      %c1_151 = arith.constant 1 : index
      %c0_152 = arith.constant 0 : index
      %c0_153 = arith.constant 0 : index
      %281 = vector.load %arg5[%c1_151, %c0_152, %c0_153] : memref<3x10x128xf32, #tpu.memory_space<vmem>>, vector<1x1x128xf32>
      %282 = vector.shape_cast %281 : vector<1x1x128xf32> to vector<1x128xf32>
      %283 = vector.broadcast %282 : vector<1x128xf32> to vector<32x128xf32>
      %284 = arith.mulf %280, %283 : vector<32x128xf32>
      %285 = arith.mulf %277, %151 : vector<32x128xf32>
      %286 = arith.mulf %284, %168 : vector<32x128xf32>
      %287 = arith.addf %285, %286 : vector<32x128xf32>
      %c1_154 = arith.constant 1 : index
      %c0_155 = arith.constant 0 : index
      %288 = vector.load %arg3[%c1_154, %c0_155] : memref<10x128xf32, #tpu.memory_space<vmem>>, vector<1x128xf32>
      %289 = vector.broadcast %288 : vector<1x128xf32> to vector<32x128xf32>
      %290 = arith.subf %36, %289 : vector<32x128xf32>
      %c1_156 = arith.constant 1 : index
      %c1_157 = arith.constant 1 : index
      %c0_158 = arith.constant 0 : index
      %291 = vector.load %arg4[%c1_156, %c1_157, %c0_158] : memref<3x10x128xf32, #tpu.memory_space<vmem>>, vector<1x1x128xf32>
      %292 = vector.shape_cast %291 : vector<1x1x128xf32> to vector<1x128xf32>
      %293 = vector.broadcast %292 : vector<1x128xf32> to vector<32x128xf32>
      %294 = arith.mulf %290, %293 : vector<32x128xf32>
      %c4_159 = arith.constant 4 : index
      %c0_160 = arith.constant 0 : index
      %295 = vector.load %arg3[%c4_159, %c0_160] : memref<10x128xf32, #tpu.memory_space<vmem>>, vector<1x128xf32>
      %296 = vector.broadcast %295 : vector<1x128xf32> to vector<32x128xf32>
      %297 = arith.subf %296, %36 : vector<32x128xf32>
      %c1_161 = arith.constant 1 : index
      %c1_162 = arith.constant 1 : index
      %c0_163 = arith.constant 0 : index
      %298 = vector.load %arg5[%c1_161, %c1_162, %c0_163] : memref<3x10x128xf32, #tpu.memory_space<vmem>>, vector<1x1x128xf32>
      %299 = vector.shape_cast %298 : vector<1x1x128xf32> to vector<1x128xf32>
      %300 = vector.broadcast %299 : vector<1x128xf32> to vector<32x128xf32>
      %301 = arith.mulf %297, %300 : vector<32x128xf32>
      %302 = arith.mulf %294, %168 : vector<32x128xf32>
      %303 = arith.mulf %301, %185 : vector<32x128xf32>
      %304 = arith.addf %302, %303 : vector<32x128xf32>
      %c2_164 = arith.constant 2 : index
      %c0_165 = arith.constant 0 : index
      %305 = vector.load %arg3[%c2_164, %c0_165] : memref<10x128xf32, #tpu.memory_space<vmem>>, vector<1x128xf32>
      %306 = vector.broadcast %305 : vector<1x128xf32> to vector<32x128xf32>
      %307 = arith.subf %36, %306 : vector<32x128xf32>
      %c1_166 = arith.constant 1 : index
      %c2_167 = arith.constant 2 : index
      %c0_168 = arith.constant 0 : index
      %308 = vector.load %arg4[%c1_166, %c2_167, %c0_168] : memref<3x10x128xf32, #tpu.memory_space<vmem>>, vector<1x1x128xf32>
      %309 = vector.shape_cast %308 : vector<1x1x128xf32> to vector<1x128xf32>
      %310 = vector.broadcast %309 : vector<1x128xf32> to vector<32x128xf32>
      %311 = arith.mulf %307, %310 : vector<32x128xf32>
      %c5_169 = arith.constant 5 : index
      %c0_170 = arith.constant 0 : index
      %312 = vector.load %arg3[%c5_169, %c0_170] : memref<10x128xf32, #tpu.memory_space<vmem>>, vector<1x128xf32>
      %313 = vector.broadcast %312 : vector<1x128xf32> to vector<32x128xf32>
      %314 = arith.subf %313, %36 : vector<32x128xf32>
      %c1_171 = arith.constant 1 : index
      %c2_172 = arith.constant 2 : index
      %c0_173 = arith.constant 0 : index
      %315 = vector.load %arg5[%c1_171, %c2_172, %c0_173] : memref<3x10x128xf32, #tpu.memory_space<vmem>>, vector<1x1x128xf32>
      %316 = vector.shape_cast %315 : vector<1x1x128xf32> to vector<1x128xf32>
      %317 = vector.broadcast %316 : vector<1x128xf32> to vector<32x128xf32>
      %318 = arith.mulf %314, %317 : vector<32x128xf32>
      %319 = arith.mulf %311, %185 : vector<32x128xf32>
      %320 = arith.mulf %318, %202 : vector<32x128xf32>
      %321 = arith.addf %319, %320 : vector<32x128xf32>
      %c3_174 = arith.constant 3 : index
      %c0_175 = arith.constant 0 : index
      %322 = vector.load %arg3[%c3_174, %c0_175] : memref<10x128xf32, #tpu.memory_space<vmem>>, vector<1x128xf32>
      %323 = vector.broadcast %322 : vector<1x128xf32> to vector<32x128xf32>
      %324 = arith.subf %36, %323 : vector<32x128xf32>
      %c1_176 = arith.constant 1 : index
      %c3_177 = arith.constant 3 : index
      %c0_178 = arith.constant 0 : index
      %325 = vector.load %arg4[%c1_176, %c3_177, %c0_178] : memref<3x10x128xf32, #tpu.memory_space<vmem>>, vector<1x1x128xf32>
      %326 = vector.shape_cast %325 : vector<1x1x128xf32> to vector<1x128xf32>
      %327 = vector.broadcast %326 : vector<1x128xf32> to vector<32x128xf32>
      %328 = arith.mulf %324, %327 : vector<32x128xf32>
      %c6_179 = arith.constant 6 : index
      %c0_180 = arith.constant 0 : index
      %329 = vector.load %arg3[%c6_179, %c0_180] : memref<10x128xf32, #tpu.memory_space<vmem>>, vector<1x128xf32>
      %330 = vector.broadcast %329 : vector<1x128xf32> to vector<32x128xf32>
      %331 = arith.subf %330, %36 : vector<32x128xf32>
      %c1_181 = arith.constant 1 : index
      %c3_182 = arith.constant 3 : index
      %c0_183 = arith.constant 0 : index
      %332 = vector.load %arg5[%c1_181, %c3_182, %c0_183] : memref<3x10x128xf32, #tpu.memory_space<vmem>>, vector<1x1x128xf32>
      %333 = vector.shape_cast %332 : vector<1x1x128xf32> to vector<1x128xf32>
      %334 = vector.broadcast %333 : vector<1x128xf32> to vector<32x128xf32>
      %335 = arith.mulf %331, %334 : vector<32x128xf32>
      %336 = arith.mulf %328, %202 : vector<32x128xf32>
      %337 = arith.mulf %335, %219 : vector<32x128xf32>
      %338 = arith.addf %336, %337 : vector<32x128xf32>
      %c4_184 = arith.constant 4 : index
      %c0_185 = arith.constant 0 : index
      %339 = vector.load %arg3[%c4_184, %c0_185] : memref<10x128xf32, #tpu.memory_space<vmem>>, vector<1x128xf32>
      %340 = vector.broadcast %339 : vector<1x128xf32> to vector<32x128xf32>
      %341 = arith.subf %36, %340 : vector<32x128xf32>
      %c1_186 = arith.constant 1 : index
      %c4_187 = arith.constant 4 : index
      %c0_188 = arith.constant 0 : index
      %342 = vector.load %arg4[%c1_186, %c4_187, %c0_188] : memref<3x10x128xf32, #tpu.memory_space<vmem>>, vector<1x1x128xf32>
      %343 = vector.shape_cast %342 : vector<1x1x128xf32> to vector<1x128xf32>
      %344 = vector.broadcast %343 : vector<1x128xf32> to vector<32x128xf32>
      %345 = arith.mulf %341, %344 : vector<32x128xf32>
      %c7_189 = arith.constant 7 : index
      %c0_190 = arith.constant 0 : index
      %346 = vector.load %arg3[%c7_189, %c0_190] : memref<10x128xf32, #tpu.memory_space<vmem>>, vector<1x128xf32>
      %347 = vector.broadcast %346 : vector<1x128xf32> to vector<32x128xf32>
      %348 = arith.subf %347, %36 : vector<32x128xf32>
      %c1_191 = arith.constant 1 : index
      %c4_192 = arith.constant 4 : index
      %c0_193 = arith.constant 0 : index
      %349 = vector.load %arg5[%c1_191, %c4_192, %c0_193] : memref<3x10x128xf32, #tpu.memory_space<vmem>>, vector<1x1x128xf32>
      %350 = vector.shape_cast %349 : vector<1x1x128xf32> to vector<1x128xf32>
      %351 = vector.broadcast %350 : vector<1x128xf32> to vector<32x128xf32>
      %352 = arith.mulf %348, %351 : vector<32x128xf32>
      %353 = arith.mulf %345, %219 : vector<32x128xf32>
      %354 = arith.mulf %352, %236 : vector<32x128xf32>
      %355 = arith.addf %353, %354 : vector<32x128xf32>
      %c5_194 = arith.constant 5 : index
      %c0_195 = arith.constant 0 : index
      %356 = vector.load %arg3[%c5_194, %c0_195] : memref<10x128xf32, #tpu.memory_space<vmem>>, vector<1x128xf32>
      %357 = vector.broadcast %356 : vector<1x128xf32> to vector<32x128xf32>
      %358 = arith.subf %36, %357 : vector<32x128xf32>
      %c1_196 = arith.constant 1 : index
      %c5_197 = arith.constant 5 : index
      %c0_198 = arith.constant 0 : index
      %359 = vector.load %arg4[%c1_196, %c5_197, %c0_198] : memref<3x10x128xf32, #tpu.memory_space<vmem>>, vector<1x1x128xf32>
      %360 = vector.shape_cast %359 : vector<1x1x128xf32> to vector<1x128xf32>
      %361 = vector.broadcast %360 : vector<1x128xf32> to vector<32x128xf32>
      %362 = arith.mulf %358, %361 : vector<32x128xf32>
      %c8_199 = arith.constant 8 : index
      %c0_200 = arith.constant 0 : index
      %363 = vector.load %arg3[%c8_199, %c0_200] : memref<10x128xf32, #tpu.memory_space<vmem>>, vector<1x128xf32>
      %364 = vector.broadcast %363 : vector<1x128xf32> to vector<32x128xf32>
      %365 = arith.subf %364, %36 : vector<32x128xf32>
      %c1_201 = arith.constant 1 : index
      %c5_202 = arith.constant 5 : index
      %c0_203 = arith.constant 0 : index
      %366 = vector.load %arg5[%c1_201, %c5_202, %c0_203] : memref<3x10x128xf32, #tpu.memory_space<vmem>>, vector<1x1x128xf32>
      %367 = vector.shape_cast %366 : vector<1x1x128xf32> to vector<1x128xf32>
      %368 = vector.broadcast %367 : vector<1x128xf32> to vector<32x128xf32>
      %369 = arith.mulf %365, %368 : vector<32x128xf32>
      %370 = arith.mulf %362, %236 : vector<32x128xf32>
      %371 = arith.mulf %369, %253 : vector<32x128xf32>
      %372 = arith.addf %370, %371 : vector<32x128xf32>
      %c6_204 = arith.constant 6 : index
      %c0_205 = arith.constant 0 : index
      %373 = vector.load %arg3[%c6_204, %c0_205] : memref<10x128xf32, #tpu.memory_space<vmem>>, vector<1x128xf32>
      %374 = vector.broadcast %373 : vector<1x128xf32> to vector<32x128xf32>
      %375 = arith.subf %36, %374 : vector<32x128xf32>
      %c1_206 = arith.constant 1 : index
      %c6_207 = arith.constant 6 : index
      %c0_208 = arith.constant 0 : index
      %376 = vector.load %arg4[%c1_206, %c6_207, %c0_208] : memref<3x10x128xf32, #tpu.memory_space<vmem>>, vector<1x1x128xf32>
      %377 = vector.shape_cast %376 : vector<1x1x128xf32> to vector<1x128xf32>
      %378 = vector.broadcast %377 : vector<1x128xf32> to vector<32x128xf32>
      %379 = arith.mulf %375, %378 : vector<32x128xf32>
      %c9_209 = arith.constant 9 : index
      %c0_210 = arith.constant 0 : index
      %380 = vector.load %arg3[%c9_209, %c0_210] : memref<10x128xf32, #tpu.memory_space<vmem>>, vector<1x128xf32>
      %381 = vector.broadcast %380 : vector<1x128xf32> to vector<32x128xf32>
      %382 = arith.subf %381, %36 : vector<32x128xf32>
      %c1_211 = arith.constant 1 : index
      %c6_212 = arith.constant 6 : index
      %c0_213 = arith.constant 0 : index
      %383 = vector.load %arg5[%c1_211, %c6_212, %c0_213] : memref<3x10x128xf32, #tpu.memory_space<vmem>>, vector<1x1x128xf32>
      %384 = vector.shape_cast %383 : vector<1x1x128xf32> to vector<1x128xf32>
      %385 = vector.broadcast %384 : vector<1x128xf32> to vector<32x128xf32>
      %386 = arith.mulf %382, %385 : vector<32x128xf32>
      %387 = arith.mulf %379, %253 : vector<32x128xf32>
      %388 = arith.mulf %386, %270 : vector<32x128xf32>
      %389 = arith.addf %387, %388 : vector<32x128xf32>
      %c0_214 = arith.constant 0 : index
      %c0_215 = arith.constant 0 : index
      %390 = vector.load %arg3[%c0_214, %c0_215] : memref<10x128xf32, #tpu.memory_space<vmem>>, vector<1x128xf32>
      %391 = vector.broadcast %390 : vector<1x128xf32> to vector<32x128xf32>
      %392 = arith.subf %36, %391 : vector<32x128xf32>
      %c2_216 = arith.constant 2 : index
      %c0_217 = arith.constant 0 : index
      %c0_218 = arith.constant 0 : index
      %393 = vector.load %arg4[%c2_216, %c0_217, %c0_218] : memref<3x10x128xf32, #tpu.memory_space<vmem>>, vector<1x1x128xf32>
      %394 = vector.shape_cast %393 : vector<1x1x128xf32> to vector<1x128xf32>
      %395 = vector.broadcast %394 : vector<1x128xf32> to vector<32x128xf32>
      %396 = arith.mulf %392, %395 : vector<32x128xf32>
      %c4_219 = arith.constant 4 : index
      %c0_220 = arith.constant 0 : index
      %397 = vector.load %arg3[%c4_219, %c0_220] : memref<10x128xf32, #tpu.memory_space<vmem>>, vector<1x128xf32>
      %398 = vector.broadcast %397 : vector<1x128xf32> to vector<32x128xf32>
      %399 = arith.subf %398, %36 : vector<32x128xf32>
      %c2_221 = arith.constant 2 : index
      %c0_222 = arith.constant 0 : index
      %c0_223 = arith.constant 0 : index
      %400 = vector.load %arg5[%c2_221, %c0_222, %c0_223] : memref<3x10x128xf32, #tpu.memory_space<vmem>>, vector<1x1x128xf32>
      %401 = vector.shape_cast %400 : vector<1x1x128xf32> to vector<1x128xf32>
      %402 = vector.broadcast %401 : vector<1x128xf32> to vector<32x128xf32>
      %403 = arith.mulf %399, %402 : vector<32x128xf32>
      %404 = arith.mulf %396, %287 : vector<32x128xf32>
      %405 = arith.mulf %403, %304 : vector<32x128xf32>
      %406 = arith.addf %404, %405 : vector<32x128xf32>
      %c1_224 = arith.constant 1 : index
      %c0_225 = arith.constant 0 : index
      %407 = vector.load %arg3[%c1_224, %c0_225] : memref<10x128xf32, #tpu.memory_space<vmem>>, vector<1x128xf32>
      %408 = vector.broadcast %407 : vector<1x128xf32> to vector<32x128xf32>
      %409 = arith.subf %36, %408 : vector<32x128xf32>
      %c2_226 = arith.constant 2 : index
      %c1_227 = arith.constant 1 : index
      %c0_228 = arith.constant 0 : index
      %410 = vector.load %arg4[%c2_226, %c1_227, %c0_228] : memref<3x10x128xf32, #tpu.memory_space<vmem>>, vector<1x1x128xf32>
      %411 = vector.shape_cast %410 : vector<1x1x128xf32> to vector<1x128xf32>
      %412 = vector.broadcast %411 : vector<1x128xf32> to vector<32x128xf32>
      %413 = arith.mulf %409, %412 : vector<32x128xf32>
      %c5_229 = arith.constant 5 : index
      %c0_230 = arith.constant 0 : index
      %414 = vector.load %arg3[%c5_229, %c0_230] : memref<10x128xf32, #tpu.memory_space<vmem>>, vector<1x128xf32>
      %415 = vector.broadcast %414 : vector<1x128xf32> to vector<32x128xf32>
      %416 = arith.subf %415, %36 : vector<32x128xf32>
      %c2_231 = arith.constant 2 : index
      %c1_232 = arith.constant 1 : index
      %c0_233 = arith.constant 0 : index
      %417 = vector.load %arg5[%c2_231, %c1_232, %c0_233] : memref<3x10x128xf32, #tpu.memory_space<vmem>>, vector<1x1x128xf32>
      %418 = vector.shape_cast %417 : vector<1x1x128xf32> to vector<1x128xf32>
      %419 = vector.broadcast %418 : vector<1x128xf32> to vector<32x128xf32>
      %420 = arith.mulf %416, %419 : vector<32x128xf32>
      %421 = arith.mulf %413, %304 : vector<32x128xf32>
      %422 = arith.mulf %420, %321 : vector<32x128xf32>
      %423 = arith.addf %421, %422 : vector<32x128xf32>
      %c2_234 = arith.constant 2 : index
      %c0_235 = arith.constant 0 : index
      %424 = vector.load %arg3[%c2_234, %c0_235] : memref<10x128xf32, #tpu.memory_space<vmem>>, vector<1x128xf32>
      %425 = vector.broadcast %424 : vector<1x128xf32> to vector<32x128xf32>
      %426 = arith.subf %36, %425 : vector<32x128xf32>
      %c2_236 = arith.constant 2 : index
      %c2_237 = arith.constant 2 : index
      %c0_238 = arith.constant 0 : index
      %427 = vector.load %arg4[%c2_236, %c2_237, %c0_238] : memref<3x10x128xf32, #tpu.memory_space<vmem>>, vector<1x1x128xf32>
      %428 = vector.shape_cast %427 : vector<1x1x128xf32> to vector<1x128xf32>
      %429 = vector.broadcast %428 : vector<1x128xf32> to vector<32x128xf32>
      %430 = arith.mulf %426, %429 : vector<32x128xf32>
      %c6_239 = arith.constant 6 : index
      %c0_240 = arith.constant 0 : index
      %431 = vector.load %arg3[%c6_239, %c0_240] : memref<10x128xf32, #tpu.memory_space<vmem>>, vector<1x128xf32>
      %432 = vector.broadcast %431 : vector<1x128xf32> to vector<32x128xf32>
      %433 = arith.subf %432, %36 : vector<32x128xf32>
      %c2_241 = arith.constant 2 : index
      %c2_242 = arith.constant 2 : index
      %c0_243 = arith.constant 0 : index
      %434 = vector.load %arg5[%c2_241, %c2_242, %c0_243] : memref<3x10x128xf32, #tpu.memory_space<vmem>>, vector<1x1x128xf32>
      %435 = vector.shape_cast %434 : vector<1x1x128xf32> to vector<1x128xf32>
      %436 = vector.broadcast %435 : vector<1x128xf32> to vector<32x128xf32>
      %437 = arith.mulf %433, %436 : vector<32x128xf32>
      %438 = arith.mulf %430, %321 : vector<32x128xf32>
      %439 = arith.mulf %437, %338 : vector<32x128xf32>
      %440 = arith.addf %438, %439 : vector<32x128xf32>
      %c3_244 = arith.constant 3 : index
      %c0_245 = arith.constant 0 : index
      %441 = vector.load %arg3[%c3_244, %c0_245] : memref<10x128xf32, #tpu.memory_space<vmem>>, vector<1x128xf32>
      %442 = vector.broadcast %441 : vector<1x128xf32> to vector<32x128xf32>
      %443 = arith.subf %36, %442 : vector<32x128xf32>
      %c2_246 = arith.constant 2 : index
      %c3_247 = arith.constant 3 : index
      %c0_248 = arith.constant 0 : index
      %444 = vector.load %arg4[%c2_246, %c3_247, %c0_248] : memref<3x10x128xf32, #tpu.memory_space<vmem>>, vector<1x1x128xf32>
      %445 = vector.shape_cast %444 : vector<1x1x128xf32> to vector<1x128xf32>
      %446 = vector.broadcast %445 : vector<1x128xf32> to vector<32x128xf32>
      %447 = arith.mulf %443, %446 : vector<32x128xf32>
      %c7_249 = arith.constant 7 : index
      %c0_250 = arith.constant 0 : index
      %448 = vector.load %arg3[%c7_249, %c0_250] : memref<10x128xf32, #tpu.memory_space<vmem>>, vector<1x128xf32>
      %449 = vector.broadcast %448 : vector<1x128xf32> to vector<32x128xf32>
      %450 = arith.subf %449, %36 : vector<32x128xf32>
      %c2_251 = arith.constant 2 : index
      %c3_252 = arith.constant 3 : index
      %c0_253 = arith.constant 0 : index
      %451 = vector.load %arg5[%c2_251, %c3_252, %c0_253] : memref<3x10x128xf32, #tpu.memory_space<vmem>>, vector<1x1x128xf32>
      %452 = vector.shape_cast %451 : vector<1x1x128xf32> to vector<1x128xf32>
      %453 = vector.broadcast %452 : vector<1x128xf32> to vector<32x128xf32>
      %454 = arith.mulf %450, %453 : vector<32x128xf32>
      %455 = arith.mulf %447, %338 : vector<32x128xf32>
      %456 = arith.mulf %454, %355 : vector<32x128xf32>
      %457 = arith.addf %455, %456 : vector<32x128xf32>
      %c4_254 = arith.constant 4 : index
      %c0_255 = arith.constant 0 : index
      %458 = vector.load %arg3[%c4_254, %c0_255] : memref<10x128xf32, #tpu.memory_space<vmem>>, vector<1x128xf32>
      %459 = vector.broadcast %458 : vector<1x128xf32> to vector<32x128xf32>
      %460 = arith.subf %36, %459 : vector<32x128xf32>
      %c2_256 = arith.constant 2 : index
      %c4_257 = arith.constant 4 : index
      %c0_258 = arith.constant 0 : index
      %461 = vector.load %arg4[%c2_256, %c4_257, %c0_258] : memref<3x10x128xf32, #tpu.memory_space<vmem>>, vector<1x1x128xf32>
      %462 = vector.shape_cast %461 : vector<1x1x128xf32> to vector<1x128xf32>
      %463 = vector.broadcast %462 : vector<1x128xf32> to vector<32x128xf32>
      %464 = arith.mulf %460, %463 : vector<32x128xf32>
      %c8_259 = arith.constant 8 : index
      %c0_260 = arith.constant 0 : index
      %465 = vector.load %arg3[%c8_259, %c0_260] : memref<10x128xf32, #tpu.memory_space<vmem>>, vector<1x128xf32>
      %466 = vector.broadcast %465 : vector<1x128xf32> to vector<32x128xf32>
      %467 = arith.subf %466, %36 : vector<32x128xf32>
      %c2_261 = arith.constant 2 : index
      %c4_262 = arith.constant 4 : index
      %c0_263 = arith.constant 0 : index
      %468 = vector.load %arg5[%c2_261, %c4_262, %c0_263] : memref<3x10x128xf32, #tpu.memory_space<vmem>>, vector<1x1x128xf32>
      %469 = vector.shape_cast %468 : vector<1x1x128xf32> to vector<1x128xf32>
      %470 = vector.broadcast %469 : vector<1x128xf32> to vector<32x128xf32>
      %471 = arith.mulf %467, %470 : vector<32x128xf32>
      %472 = arith.mulf %464, %355 : vector<32x128xf32>
      %473 = arith.mulf %471, %372 : vector<32x128xf32>
      %474 = arith.addf %472, %473 : vector<32x128xf32>
      %c5_264 = arith.constant 5 : index
      %c0_265 = arith.constant 0 : index
      %475 = vector.load %arg3[%c5_264, %c0_265] : memref<10x128xf32, #tpu.memory_space<vmem>>, vector<1x128xf32>
      %476 = vector.broadcast %475 : vector<1x128xf32> to vector<32x128xf32>
      %477 = arith.subf %36, %476 : vector<32x128xf32>
      %c2_266 = arith.constant 2 : index
      %c5_267 = arith.constant 5 : index
      %c0_268 = arith.constant 0 : index
      %478 = vector.load %arg4[%c2_266, %c5_267, %c0_268] : memref<3x10x128xf32, #tpu.memory_space<vmem>>, vector<1x1x128xf32>
      %479 = vector.shape_cast %478 : vector<1x1x128xf32> to vector<1x128xf32>
      %480 = vector.broadcast %479 : vector<1x128xf32> to vector<32x128xf32>
      %481 = arith.mulf %477, %480 : vector<32x128xf32>
      %c9_269 = arith.constant 9 : index
      %c0_270 = arith.constant 0 : index
      %482 = vector.load %arg3[%c9_269, %c0_270] : memref<10x128xf32, #tpu.memory_space<vmem>>, vector<1x128xf32>
      %483 = vector.broadcast %482 : vector<1x128xf32> to vector<32x128xf32>
      %484 = arith.subf %483, %36 : vector<32x128xf32>
      %c2_271 = arith.constant 2 : index
      %c5_272 = arith.constant 5 : index
      %c0_273 = arith.constant 0 : index
      %485 = vector.load %arg5[%c2_271, %c5_272, %c0_273] : memref<3x10x128xf32, #tpu.memory_space<vmem>>, vector<1x1x128xf32>
      %486 = vector.shape_cast %485 : vector<1x1x128xf32> to vector<1x128xf32>
      %487 = vector.broadcast %486 : vector<1x128xf32> to vector<32x128xf32>
      %488 = arith.mulf %484, %487 : vector<32x128xf32>
      %489 = arith.mulf %481, %372 : vector<32x128xf32>
      %490 = arith.mulf %488, %389 : vector<32x128xf32>
      %491 = arith.addf %489, %490 : vector<32x128xf32>
      %492 = arith.index_cast %14 : i32 to index
      %c128 = arith.constant 128 : index
      %493 = vector.load %arg9[%492, %c128] : memref<32x896xf32, #tpu.memory_space<vmem>>, vector<32x128xf32>
      tpu.vector_store %arg9[%492, %c128], %406 {strides = array<i32>} : memref<32x896xf32, #tpu.memory_space<vmem>>, vector<32x128xf32>,
      %494 = arith.index_cast %14 : i32 to index
      %c256 = arith.constant 256 : index
      %495 = vector.load %arg9[%494, %c256] : memref<32x896xf32, #tpu.memory_space<vmem>>, vector<32x128xf32>
      tpu.vector_store %arg9[%494, %c256], %423 {strides = array<i32>} : memref<32x896xf32, #tpu.memory_space<vmem>>, vector<32x128xf32>,
      %496 = arith.index_cast %14 : i32 to index
      %c384 = arith.constant 384 : index
      %497 = vector.load %arg9[%496, %c384] : memref<32x896xf32, #tpu.memory_space<vmem>>, vector<32x128xf32>
      tpu.vector_store %arg9[%496, %c384], %440 {strides = array<i32>} : memref<32x896xf32, #tpu.memory_space<vmem>>, vector<32x128xf32>,
      %498 = arith.index_cast %14 : i32 to index
      %c512 = arith.constant 512 : index
      %499 = vector.load %arg9[%498, %c512] : memref<32x896xf32, #tpu.memory_space<vmem>>, vector<32x128xf32>
      tpu.vector_store %arg9[%498, %c512], %457 {strides = array<i32>} : memref<32x896xf32, #tpu.memory_space<vmem>>, vector<32x128xf32>,
      %500 = arith.index_cast %14 : i32 to index
      %c640 = arith.constant 640 : index
      %501 = vector.load %arg9[%500, %c640] : memref<32x896xf32, #tpu.memory_space<vmem>>, vector<32x128xf32>
      tpu.vector_store %arg9[%500, %c640], %474 {strides = array<i32>} : memref<32x896xf32, #tpu.memory_space<vmem>>, vector<32x128xf32>,
      %502 = arith.index_cast %14 : i32 to index
      %c768 = arith.constant 768 : index
      %503 = vector.load %arg9[%502, %c768] : memref<32x896xf32, #tpu.memory_space<vmem>>, vector<32x128xf32>
      tpu.vector_store %arg9[%502, %c768], %491 {strides = array<i32>} : memref<32x896xf32, #tpu.memory_space<vmem>>, vector<32x128xf32>,
      %c1_i32 = arith.constant 1 : i32
    } else {
    }
    %c0 = arith.constant 0 : index
    %c0_1 = arith.constant 0 : index
    %3 = vector.load %arg9[%c0, %c0_1] : memref<32x896xf32, #tpu.memory_space<vmem>>, vector<32x896xf32>
    %c0_2 = arith.constant 0 : index
    %c0_3 = arith.constant 0 : index
    %4 = vector.load %arg6[%c0_2, %c0_3] : memref<896x128xf32, #tpu.memory_space<vmem>>, vector<896x128xf32>
    %cst = arith.constant dense<0.000000e+00> : vector<32x128xf32>
    %5 = tpu.matmul %3, %4, %cst {dimension_numbers = #tpu.dot_dimension_numbers<[1], [0], [0], [1], [0, 0, 1, 1], [], []>} : vector<32x896xf32>, vector<896x128xf32>, vector<32x128xf32> -> vector<32x128xf32>
    %c0_4 = arith.constant 0 : index
    %c0_5 = arith.constant 0 : index
    %6 = vector.load %arg7[%c0_4, %c0_5] : memref<1x128xf32, #tpu.memory_space<vmem>>, vector<1x128xf32>
    %7 = vector.broadcast %6 : vector<1x128xf32> to vector<32x128xf32>
    %8 = arith.addf %5, %7 : vector<32x128xf32>
    %c0_6 = arith.constant 0 : index
    %c0_7 = arith.constant 0 : index
    %9 = vector.load %arg8[%c0_6, %c0_7] : memref<32x128xf32, #tpu.memory_space<vmem>>, vector<32x128xf32>
    tpu.vector_store %arg8[%c0_6, %c0_7], %8 {strides = array<i32>} : memref<32x128xf32, #tpu.memory_space<vmem>>, vector<32x128xf32>,
    return
  }
  func.func @transform_0(%arg0: i32, %arg1: i32) -> (i32, i32) {
    %c0_i32 = arith.constant 0 : i32
    %c0_i32_0 = arith.constant 0 : i32
    return %arg0, %c0_i32 : i32, i32
  }
  func.func @transform_1(%arg0: i32, %arg1: i32) -> (i32, i32) {
    %c0_i32 = arith.constant 0 : i32
    %c0_i32_0 = arith.constant 0 : i32
    %c0_i32_1 = arith.constant 0 : i32
    return %c0_i32, %c0_i32_0 : i32, i32
  }
  func.func @transform_2(%arg0: i32, %arg1: i32) -> (i32, i32, i32) {
    %c0_i32 = arith.constant 0 : i32
    %c0_i32_0 = arith.constant 0 : i32
    %c0_i32_1 = arith.constant 0 : i32
    %c0_i32_2 = arith.constant 0 : i32
    return %c0_i32, %c0_i32_0, %c0_i32_1 : i32, i32, i32
  }
  func.func @transform_3(%arg0: i32, %arg1: i32) -> (i32, i32, i32) {
    %c0_i32 = arith.constant 0 : i32
    %c0_i32_0 = arith.constant 0 : i32
    %c0_i32_1 = arith.constant 0 : i32
    %c0_i32_2 = arith.constant 0 : i32
    return %c0_i32, %c0_i32_0, %c0_i32_1 : i32, i32, i32
  }
  func.func @transform_4(%arg0: i32, %arg1: i32) -> (i32, i32) {
    %c0_i32 = arith.constant 0 : i32
    %c0_i32_0 = arith.constant 0 : i32
    return %c0_i32, %arg1 : i32, i32
  }
  func.func @transform_5(%arg0: i32, %arg1: i32) -> (i32, i32) {
    %c0_i32 = arith.constant 0 : i32
    %c0_i32_0 = arith.constant 0 : i32
    return %c0_i32, %arg1 : i32, i32
  }
  func.func @transform_6(%arg0: i32, %arg1: i32) -> (i32, i32) {
    %c0_i32 = arith.constant 0 : i32
    return %arg0, %arg1 : i32, i32
  }
}

</mosaic_0001>

<bundles_post_ra>
// kernel: tpu_custom_call.1
= control target key start
LH: loop header
LB: loop body
LE: loop exit
PB: predicated region body
PF: predicated region fallthrough
CT: control target
= control target key end

     0   :  { %11 = vsyncpa [#allocation4], 0  ;;  %s3072_s0 = inlined_call_operand.vmem [shape: f32[32,128], index: 0, kind: input, shape index: {}]   ;;  %s3073_s1 = inlined_call_operand.vmem [shape: f32[10,128], index: 1, kind: input, shape index: {}]   ;;  %s3074_s2 = inlined_call_operand.vmem [shape: f32[3,10,128], index: 2, kind: input, shape index: {}]   ;;  %s3075_s3 = inlined_call_operand.vmem [shape: f32[3,10,128], index: 3, kind: input, shape index: {}]   ;;  %s3076_s4 = inlined_call_operand.hbm [shape: f32[896,128], index: 4, kind: input, shape index: {}]   ;;  %s3077_s5 = inlined_call_operand.vmem [shape: f32[1,128], index: 5, kind: input, shape index: {}]   ;;  %s3078_s6 = inlined_call_operand.hbm [shape: f32[32,128], index: 6, kind: output, shape index: {}]  }
   0x1   :  { %12 = vsyncpa [#allocation5], 0  ;;  %s1919_s21 = smov [#allocation3]  }
   0x2   :  { %s26_s22 = sshll.u32 %s1919_s21, 4  ;;  %s27_s22 = int_to_ptr.vmem [resolvable:$true] %s26_s22 }
   0x3   :  { %s1883_s23 = scalar_lea.vmem %s27_s22, 14336  ;;  %p1888_p1 = scmp.lt.s32.totalorder %s27_s22, %s27_s22 }
   0x4   :  { %p1884_p0 = scmp.ne.s32.totalorder %s27_s22, %s1883_s23  ;;  %p1889_p2 = scmp.lt.s32.totalorder %s1883_s23, %s1883_s23 }
   0x6   :  { %p1890_p3 = por %p1889_p2, %p1888_p1 }
   0x8   :  { %p1891_p4 = pnand %p1890_p3, %p1884_p0 }
   0xa   :  { %1894 = shalt.err (!%p1891_p4)
}
   0xb   :  { %s1920_s24 = smov 128   ;;  %s1921_s25 = smov 8  }
   0xc   :  { %32 = dma.hbm_to_vmem [thread:$0]  %s3076_s4, 14336, %s27_s22, [#allocation4], %s1920_s24, %s1920_s24, %s1921_s25  }
   0xd   :  { %1915 = dma.done.wait [#allocation4], 14336  }
   0xe   :  { %1916 = vsyncadd [#allocation4], 4294952960  ;;  %v45_v0 = vld [vmem:[%s3072_s0] sm:$0xff]  ;;  %v47_v1 = vld [vmem:[%s3072_s0 + $0x10] sm:$0xff]  ;;  %v42_v4 = vlaneseq }
   0xf   :  { %49 = vadd.xlane.f32.xlu0 %v45_v0  ;;  %53 = vadd.xlane.f32.xlu1 %v47_v1  ;;  %v46_v2 = vld [vmem:[%s3072_s0 + $0x8] sm:$0xff]  ;;  %v48_v3 = vld [vmem:[%s3072_s0 + $0x18] sm:$0xff]  ;;  %v1140_v28 = vld [vmem:[#allocation3 + $0x1f0] sm:$0xff] }
  0x10   :  { %v43_v5 = vand.u32 127, %v42_v4  ;;  %v1141_v26 = vld [vmem:[#allocation3 + $0x1f8] sm:$0xff]  ;;  %v1124_v29 = vld [vmem:[#allocation3 + $0x170] sm:$0xff]  ;;  %v1139_v30 = vld [vmem:[#allocation3 + $0x1e8] sm:$0xff] }
  0x11   :  { %1685 = vmatprep.subr.mxu1 %v1141_v26  ;;  %v1125_v27 = vld [vmem:[#allocation3 + $0x178] sm:$0xff]  ;;  %v1123_v31 = vld [vmem:[#allocation3 + $0x168] sm:$0xff]  ;;  %v1138_v32 = vld [vmem:[#allocation3 + $0x1e0] sm:$0xff] }
  0x12   :  { %vm44_vm0 = vcmp.lt.s32.totalorder %v43_v5, 32  ;;  %1686 = vmatpush3.msra.mxu1 %v1125_v27  ;;  %v1122_v33 = vld [vmem:[#allocation3 + $0x160] sm:$0xff]  ;;  %v1137_v34 = vld [vmem:[#allocation3 + $0x1d8] sm:$0xff]  ;;  %v1136_v36 = vld [vmem:[#allocation3 + $0x1d0] sm:$0xff] }
  0x13   :  { %51 = vadd.xlane.f32.xlu0 %v46_v2  ;;  %55 = vadd.xlane.f32.xlu1 %v48_v3  ;;  %v1121_v35 = vld [vmem:[#allocation3 + $0x158] sm:$0xff]  ;;  %v1120_v37 = vld [vmem:[#allocation3 + $0x150] sm:$0xff]  ;;  %v1135_v38 = vld [vmem:[#allocation3 + $0x1c8] sm:$0xff] }
  0x14   :  { %1687 = vmatprep.subr.mxu1 %v1140_v28  ;;  %v1119_v39 = vld [vmem:[#allocation3 + $0x148] sm:$0xff]  ;;  %v1134_v40 = vld [vmem:[#allocation3 + $0x1c0] sm:$0xff]  ;;  %v1133_v42 = vld [vmem:[#allocation3 + $0x1b8] sm:$0xff] }
  0x15   :  { %1688 = vmatpush3.msra.mxu1 %v1124_v29  ;;  %v1118_v41 = vld [vmem:[#allocation3 + $0x140] sm:$0xff]  ;;  %v1109_v43 = vld [vmem:[#allocation3 + $0xf8] sm:$0xff]  ;;  %v1132_v46 = vld [vmem:[#allocation3 + $0x1b0] sm:$0xff] }
  0x16   :  { %1689 = vmatprep.subr.mxu1 %v1139_v30  ;;  %v1117_v44 = vld [vmem:[#allocation3 + $0x138] sm:$0xff]  ;;  %1641 = vmatprep.subr.mxu0 %v1109_v43  ;;  %v1108_v47 = vld [vmem:[#allocation3 + $0xf0] sm:$0xff]  ;;  %v1131_v50 = vld [vmem:[#allocation3 + $0x1a8] sm:$0xff] }
  0x17   :  { %1690 = vmatpush3.msra.mxu1 %v1123_v31  ;;  %v1093_v45 = vld [vmem:[#allocation3 + $0x78] sm:$0xff]  ;;  %v1116_v48 = vld [vmem:[#allocation3 + $0x130] sm:$0xff]  ;;  %v1107_v51 = vld [vmem:[#allocation3 + $0xe8] sm:$0xff] }
  0x18   :  { %1691 = vmatprep.subr.mxu1 %v1138_v32  ;;  %1642 = vmatpush3.msra.mxu0 %v1093_v45  ;;  %v1092_v49 = vld [vmem:[#allocation3 + $0x70] sm:$0xff]  ;;  %v1115_v52 = vld [vmem:[#allocation3 + $0x128] sm:$0xff]  ;;  %v1130_v54 = vld [vmem:[#allocation3 + $0x1a0] sm:$0xff] }
  0x19   :  { %1692 = vmatpush3.msra.mxu1 %v1122_v33  ;;  %1643 = vmatprep.subr.mxu0 %v1108_v47  ;;  %v1091_v53 = vld [vmem:[#allocation3 + $0x68] sm:$0xff]  ;;  %v1106_v55 = vld [vmem:[#allocation3 + $0xe0] sm:$0xff]  ;;  %v1129_v58 = vld [vmem:[#allocation3 + $0x198] sm:$0xff] }
  0x1a   :  { %1693 = vmatprep.subr.mxu1 %v1137_v34  ;;  %1644 = vmatpush3.msra.mxu0 %v1092_v49  ;;  %v1114_v56 = vld [vmem:[#allocation3 + $0x120] sm:$0xff]  ;;  %v1105_v59 = vld [vmem:[#allocation3 + $0xd8] sm:$0xff]  ;;  %v1128_v62 = vld [vmem:[#allocation3 + $0x190] sm:$0xff] }
  0x1b   :  { %1694 = vmatpush3.msra.mxu1 %v1121_v35  ;;  %1645 = vmatprep.subr.mxu0 %v1107_v51  ;;  %v1090_v57 = vld [vmem:[#allocation3 + $0x60] sm:$0xff]  ;;  %v1113_v60 = vld [vmem:[#allocation3 + $0x118] sm:$0xff]  ;;  %v1104_v63 = vld [vmem:[#allocation3 + $0xd0] sm:$0xff] }
  0x1c   :  { %1695 = vmatprep.subr.mxu1 %v1136_v36  ;;  %1646 = vmatpush3.msra.mxu0 %v1091_v53  ;;  %v1089_v61 = vld [vmem:[#allocation3 + $0x58] sm:$0xff]  ;;  %v1111_v4 = vld [vmem:[#allocation3 + $0x108] sm:$0xff]  ;;  %v1080_v26 = vld [vmem:[#allocation3 + $0x10] sm:$0xff] }
  0x1d   :  { %1696 = vmatpush3.msra.mxu1 %v1120_v37  ;;  %1647 = vmatprep.subr.mxu0 %v1106_v55  ;;  %v1087_v5 = vld [vmem:[#allocation3 + $0x48] sm:$0xff]  ;;  %v1094_v29 = vld [vmem:[#allocation3 + $0x80] sm:$0xff]  ;;  %v1173_v31 = vld [vmem:[#allocation3 + $0x2f8] sm:$0xff]  ;;  %v3079_v55 = vmov 0.0  }
  0x1e   :  { %1697 = vmatprep.subr.mxu1 %v1135_v38  ;;  %1648 = vmatpush3.msra.mxu0 %v1090_v57  ;;  %v1095_v27 = vld [vmem:[#allocation3 + $0x88] sm:$0xff]  ;;  %v1078_v30 = vld [vmem:[#allocation3] sm:$0xff] }
  0x1f   :  { %1698 = vmatpush3.msra.mxu1 %v1119_v39  ;;  %1649 = vmatprep.subr.mxu0 %v1105_v59  ;;  %v1079_v28 = vld [vmem:[#allocation3 + $0x8] sm:$0xff]  ;;  %v1999_v45 = vld [vmem:[%s3073_s1] ss:$0 sm:$0xff]  ;;  %v2009_v47 = vld [vmem:[%s3073_s1 + $0x2] ss:$0 sm:$0xff] }
  0x20   :  { %1699 = vmatprep.subr.mxu1 %v1134_v40  ;;  %1650 = vmatpush3.msra.mxu0 %v1089_v61  ;;  %3122 = vst [vmem:[#allocation9_spill] sm:$0xff] %v1999_v45  ;;  %v2017_v49 = vld [vmem:[%s3073_s1 + $0x3] ss:$0 sm:$0xff]  ;;  %v2043_v51 = vld [vmem:[%s3074_s2] ss:$0 sm:$0xff] }
  0x21   :  { %1700 = vmatpush3.msra.mxu1 %v1118_v41  ;;  %1651 = vmatprep.subr.mxu0 %v1104_v63  ;;  %3123 = vst [vmem:[#allocation10_spill] sm:$0xff] %v2043_v51  ;;  %v2061_v59 = vld [vmem:[%s3074_s2 + $0x1] ss:$0 sm:$0xff] }
  0x22   :  { %1701 = vmatprep.subr.mxu1 %v1133_v42 }
  0x23   :  { %1702 = vmatpush3.msra.mxu1 %v1117_v44 }
  0x24   :  { %1703 = vmatprep.subr.mxu1 %v1132_v46  ;;  %v2004_v46 = vld [vmem:[%s3073_s1 + $0x1] ss:$0 sm:$0xff] }
  0x25   :  { %1704 = vmatpush3.msra.mxu1 %v1116_v48 }
  0x26   :  { %1705 = vmatprep.subr.mxu1 %v1131_v50  ;;  %v2022_v50 = vld [vmem:[%s3073_s1 + $0x4] ss:$0 sm:$0xff] }
  0x27   :  { %1706 = vmatpush3.msra.mxu1 %v1115_v52  ;;  %v2048_v52 = vld [vmem:[%s3075_s3] ss:$0 sm:$0xff] }
  0x28   :  { %1707 = vmatprep.subr.mxu1 %v1130_v54  ;;  %3124 = vst [vmem:[#allocation11_spill] sm:$0xff] %v2048_v52 }
  0x29   :  { %1708 = vmatpush3.msra.mxu1 %v1114_v56 }
  0x2a   :  { %1709 = vmatprep.subr.mxu1 %v1129_v58 }
  0x2b   :  { %1710 = vmatpush3.msra.mxu1 %v1113_v60 }
  0x2c   :  { %1711 = vmatprep.subr.mxu1 %v1128_v62 }
  0x98   :  { %v50_v6 = vpop.xlane.xlu0 %49  ;;  %v54_v7 = vpop.xlane.xlu1 %53 }
  0x99   :  { %v57_v8 = vmul.f32 0.03125, %v50_v6  ;;  %v59_v9 = vmul.f32 0.03125, %v54_v7  ;;  %v1126_v6 = vld [vmem:[#allocation3 + $0x180] sm:$0xff] }
  0x9a   :  { %v1102_v7 = vld [vmem:[#allocation3 + $0xc0] sm:$0xff] }
  0x9b   :  { %v61_v10 = vsub.f32 %v45_v0, %v57_v8  ;;  %v63_v11 = vsub.f32 %v47_v1, %v59_v9  ;;  %v1112_v0 = vld [vmem:[#allocation3 + $0x110] sm:$0xff]  ;;  %v1110_v8 = vld [vmem:[#allocation3 + $0x100] sm:$0xff] }
  0x9c   :  { %v52_v12 = vpop.xlane.xlu0 %51  ;;  %v56_v13 = vpop.xlane.xlu1 %55  ;;  %v1088_v1 = vld [vmem:[#allocation3 + $0x50] sm:$0xff]  ;;  %1712 = vmatpush3.msra.mxu1 %v1112_v0  ;;  %v1086_v9 = vld [vmem:[#allocation3 + $0x40] sm:$0xff] }
  0x9d   :  { %v58_v14 = vmul.f32 0.03125, %v52_v12  ;;  %v60_v15 = vmul.f32 0.03125, %v56_v13  ;;  %v1977_v16 = vsel %vm44_vm0, %v61_v10, 0.0  ;;  %v1979_v17 = vsel %vm44_vm0, %v63_v11, 0.0  ;;  %1652 = vmatpush3.msra.mxu0 %v1088_v1  ;;  %v1993_v10 = vld [vmem:[#allocation3 + $0x378] sm:$0xff]  ;;  %v1100_v13 = vld [vmem:[#allocation3 + $0xb0] sm:$0xff] }
  0x9e   :  { %v71_v18 = vmul.f32 %v1977_v16, %v1977_v16  ;;  %v73_v21 = vmul.f32 %v1979_v17, %v1979_v17  ;;  %v1101_v11 = vld [vmem:[#allocation3 + $0xb8] sm:$0xff] }
  0x9f   :  { %v62_v19 = vsub.f32 %v46_v2, %v58_v14  ;;  %v64_v20 = vsub.f32 %v48_v3, %v60_v15  ;;  %v1127_v2 = vld [vmem:[#allocation3 + $0x188] sm:$0xff]  ;;  %v1085_v12 = vld [vmem:[#allocation3 + $0x38] sm:$0xff]  ;;  %v1084_v14 = vld [vmem:[#allocation3 + $0x30] sm:$0xff] }
  0xa0   :  { %75 = vadd.xlane.f32.xlu0 %v71_v18  ;;  %v1103_v3 = vld [vmem:[#allocation3 + $0xc8] sm:$0xff]  ;;  %1713 = vmatprep.subr.mxu1 %v1127_v2 }
  0xa1   :  { %v1985_v22 = vsel %vm44_vm0, %v62_v19, 0.0  ;;  %v1987_v23 = vsel %vm44_vm0, %v64_v20, 0.0  ;;  %1653 = vmatprep.subr.mxu0 %v1103_v3  ;;  %1714 = vmatpush3.msra.mxu1 %v1111_v4  ;;  %v1099_v15 = vld [vmem:[#allocation3 + $0xa8] sm:$0xff]  ;;  %v1098_v19 = vld [vmem:[#allocation3 + $0xa0] sm:$0xff] }
  0xa2   :  { %v72_v24 = vmul.f32 %v1985_v22, %v1985_v22  ;;  %v74_v25 = vmul.f32 %v1987_v23, %v1987_v23  ;;  %1654 = vmatpush3.msra.mxu0 %v1087_v5  ;;  %1715 = vmatprep.subr.mxu1 %v1126_v6  ;;  %v1083_v18 = vld [vmem:[#allocation3 + $0x28] sm:$0xff]  ;;  %v1082_v20 = vld [vmem:[#allocation3 + $0x20] sm:$0xff]  ;;  %v2110_v5 = vld [vmem:[%s3074_s2 + $0x10] ss:$0 sm:$0xff] }
  0xa3   :  { %1655 = vmatprep.subr.mxu0 %v1102_v7  ;;  %1716 = vmatpush3.msra.mxu1 %v1110_v8  ;;  %v2105_v4 = vld [vmem:[%s3075_s3 + $0x2] ss:$0 sm:$0xff]  ;;  %3125 = vst [vmem:[#allocation12_spill] sm:$0xff] %v2110_v5 }
  0xa4   :  { %79 = vadd.xlane.f32.xlu0 %v73_v21  ;;  %77 = vadd.xlane.f32.xlu1 %v72_v24  ;;  %v1097_v21 = vld [vmem:[#allocation3 + $0x98] sm:$0xff] }
  0xa5   :  { %1656 = vmatpush3.msra.mxu0 %v1086_v9  ;;  %1793 = vmatprep.subr.mxu1 %v1993_v10  ;;  %v1081_v24 = vld [vmem:[#allocation3 + $0x18] sm:$0xff] }
  0xa6   :  { %1657 = vmatprep.subr.mxu0 %v1101_v11 }
  0xa7   :  { %1658 = vmatpush3.msra.mxu0 %v1085_v12  ;;  %v2123_v12 = vld [vmem:[%s3075_s3 + $0x10] ss:$0 sm:$0xff] }
  0xa8   :  { %81 = vadd.xlane.f32.xlu1 %v74_v25  ;;  %1659 = vmatprep.subr.mxu0 %v1100_v13  ;;  %v1096_v25 = vld [vmem:[#allocation3 + $0x90] sm:$0xff]  ;;  %3126 = vst [vmem:[#allocation13_spill] sm:$0xff] %v2123_v12 }
  0xa9   :  { %1660 = vmatpush3.msra.mxu0 %v1084_v14  ;;  %v2128_v13 = vld [vmem:[%s3074_s2 + $0x11] ss:$0 sm:$0xff] }
  0xaa   :  { %1661 = vmatprep.subr.mxu0 %v1099_v15 }
  0xab   :  { %1662 = vmatpush3.msra.mxu0 %v1083_v18 }
  0xac   :  { %1663 = vmatprep.subr.mxu0 %v1098_v19 }
  0xad   :  { %1664 = vmatpush3.msra.mxu0 %v1082_v20  ;;  %v2138_v20 = vld [vmem:[%s3075_s3 + $0x11] ss:$0 sm:$0xff] }
  0xae   :  { %1665 = vmatprep.subr.mxu0 %v1097_v21  ;;  %v2143_v21 = vld [vmem:[%s3074_s2 + $0x20] ss:$0 sm:$0xff] }
  0xaf   :  { %1666 = vmatpush3.msra.mxu0 %v1081_v24  ;;  %3127 = vst [vmem:[#allocation14_spill] sm:$0xff] %v2143_v21 }
  0xb0   :  { %1667 = vmatprep.subr.mxu0 %v1096_v25 }
  0xb1   :  { %1668 = vmatpush3.msra.mxu0 %v1080_v26 }
  0xb2   :  { %1669 = vmatprep.subr.mxu0 %v1095_v27  ;;  %v2150_v27 = vld [vmem:[%s3075_s3 + $0x20] ss:$0 sm:$0xff] }
  0xb3   :  { %1670 = vmatpush3.msra.mxu0 %v1079_v28  ;;  %3128 = vst [vmem:[#allocation15_spill] sm:$0xff] %v2150_v27  ;;  %v2155_v28 = vld [vmem:[%s3073_s1 + $0x5] ss:$0 sm:$0xff] }
  0xb4   :  { %1671 = vmatprep.subr.mxu0 %v1094_v29 }
  0xb5   :  { %1672 = vmatpush3.msra.mxu0 %v1078_v30 }
  0xb6   :  { %1729 = vmatprep.subr.mxu0 %v1173_v31 }
 0x129   :  { %v76_v32 = vpop.xlane.xlu0 %75 }
 0x12a   :  { %v83_v33 = vmul.f32 0.03125, %v76_v32 }
 0x12c   :  { %v87_v34 = vadd.f32 1e-05, %v83_v33 }
 0x12d   :  { %v78_v35 = vpop.xlane.xlu1 %77  ;;  %v80_v36 = vpop.xlane.xlu0 %79 }
 0x12e   :  { %1836 = vrsqrt.f32 %v87_v34  ;;  %v84_v37 = vmul.f32 0.03125, %v78_v35  ;;  %v85_v38 = vmul.f32 0.03125, %v80_v36 }
 0x130   :  { %v88_v39 = vadd.f32 1e-05, %v84_v37  ;;  %v89_v40 = vadd.f32 1e-05, %v85_v38  ;;  %v2166_v37 = vld [vmem:[%s3073_s1 + $0x6] ss:$0 sm:$0xff] }
 0x131   :  { %v82_v41 = vpop.xlane.xlu1 %81  ;;  %v2171_v38 = vld [vmem:[%s3073_s1 + $0x7] ss:$0 sm:$0xff] }
 0x132   :  { %1838 = vrsqrt.f32 %v88_v39  ;;  %v86_v42 = vmul.f32 0.03125, %v82_v41 }
 0x133   :  { %1840 = vrsqrt.f32 %v89_v40 }
 0x134   :  { %v90_v43 = vadd.f32 1e-05, %v86_v42 }
 0x136   :  { %1842 = vrsqrt.f32 %v90_v43 }
 0x13b   :  { %v1837_v44 = vpop.eup %1836 }
 0x13c   :  { %v2012_v48 = vmul.f32 %v1837_v44, %v1977_v16  ;;  %v2183_v44 = vld [vmem:[%s3074_s2 + $0x3] ss:$0 sm:$0xff] }
 0x13e   :  { %vm140_vm1 = vcmp.ge.f32.partialorder %v2012_v48, %v1999_v45  ;;  %vm148_vm2 = vcmp.lt.f32.partialorder %v2012_v48, %v2004_v46  ;;  %vm161_vm3 = vcmp.ge.f32.partialorder %v2012_v48, %v2004_v46  ;;  %vm169_vm4 = vcmp.lt.f32.partialorder %v2012_v48, %v2009_v47 }
 0x13f   :  { %v1839_v16 = vpop.eup %1838  ;;  %vm152_vm5 = vmand %vm140_vm1, %vm148_vm2  ;;  %vm182_vm6 = vcmp.ge.f32.partialorder %v2012_v48, %v2009_v47  ;;  %vm190_vm7 = vcmp.lt.f32.partialorder %v2012_v48, %v2017_v49  ;;  %vm203_vm8 = vcmp.ge.f32.partialorder %v2012_v48, %v2017_v49  ;;  %vm211_vm9 = vcmp.lt.f32.partialorder %v2012_v48, %v2022_v50 }
 0x140   :  { %v1841_v53 = vpop.eup %1840  ;;  %v2051_v54 = vmul.f32 %v1839_v16, %v1985_v22  ;;  %v156_v56 = vsel %vm152_vm5, 1.0, %v3079_v55  ;;  %vm173_vm10 = vmand %vm161_vm3, %vm169_vm4  ;;  %v328_v57 = vsub.f32 %v2012_v48, %v1999_v45  ;;  %v341_v58 = vsub.f32 %v2009_v47, %v2012_v48  ;;  %v2066_v22 = vld [vmem:[%s3075_s3 + $0x1] ss:$0 sm:$0xff] }
 0x141   :  { %v2069_v60 = vmul.f32 %v1841_v53, %v1979_v17  ;;  %v177_v61 = vsel %vm173_vm10, 1.0, %v3079_v55  ;;  %vm194_vm11 = vmand %vm182_vm6, %vm190_vm7  ;;  %v2080_v62 = vsub.f32 %v2012_v48, %v2004_v46  ;;  %v379_v63 = vsub.f32 %v2017_v49, %v2012_v48  ;;  %v2087_v17 = vld [vmem:[%s3074_s2 + $0x2] ss:$0 sm:$0xff]  ;;  %v2195_v53 = vld [vmem:[%s3075_s3 + $0x3] ss:$0 sm:$0xff] }
 0x142   :  { %v198_v0 = vsel %vm194_vm11, 1.0, %v3079_v55  ;;  %vm215_vm12 = vmand %vm203_vm8, %vm211_vm9  ;;  %v337_v1 = vmul.f32 %v2043_v51, %v328_v57  ;;  %v350_v2 = vmul.f32 %v2048_v52, %v341_v58  ;;  %v2100_v3 = vsub.f32 %v2012_v48, %v2009_v47 }
 0x143   :  { %v1843_v6 = vpop.eup %1842  ;;  %v2113_v7 = vsel %vm215_vm12, 1.0, %v3079_v55  ;;  %v375_v8 = vmul.f32 %v2061_v59, %v2080_v62  ;;  %v388_v9 = vmul.f32 %v2066_v22, %v379_v63  ;;  %v417_v11 = vsub.f32 %v2022_v50, %v2012_v48 }
 0x144   :  { %v2131_v14 = vmul.f32 %v1843_v6, %v1987_v23  ;;  %v354_v15 = vmul.f32 %v337_v1, %v156_v56  ;;  %v358_v18 = vmul.f32 %v350_v2, %v177_v61  ;;  %v413_v19 = vmul.f32 %v2087_v17, %v2100_v3  ;;  %v2200_v56 = vld [vmem:[%s3074_s2 + $0x4] ss:$0 sm:$0xff]  ;;  %v2214_v1 = vld [vmem:[%s3074_s2 + $0x5] ss:$0 sm:$0xff] }
 0x145   :  { %v392_v24 = vmul.f32 %v375_v8, %v177_v61  ;;  %v396_v25 = vmul.f32 %v388_v9, %v198_v0  ;;  %v426_v23 = vmul.f32 %v2105_v4, %v417_v11  ;;  %v638_v26 = vmul.f32 %v2110_v5, %v328_v57 }
 0x146   :  { %v362_v29 = vadd.f32 %v358_v18, %v354_v15  ;;  %v430_v30 = vmul.f32 %v413_v19, %v198_v0  ;;  %v648_v31 = vmul.f32 %v2123_v12, %v379_v63  ;;  %v669_v32 = vmul.f32 %v2128_v13, %v2080_v62  ;;  %v2209_v0 = vld [vmem:[%s3075_s3 + $0x4] ss:$0 sm:$0xff] }
 0x147   :  { %v400_v33 = vadd.f32 %v396_v25, %v392_v24  ;;  %v434_v34 = vmul.f32 %v426_v23, %v2113_v7  ;;  %v678_v35 = vmul.f32 %v2138_v20, %v417_v11  ;;  %v850_v36 = vmul.f32 %v2143_v21, %v328_v57 }
 0x148   :  { %v652_v39 = vmul.f32 %v638_v26, %v362_v29  ;;  %v860_v40 = vmul.f32 %v2150_v27, %v417_v11  ;;  %vm224_vm13 = vcmp.ge.f32.partialorder %v2012_v48, %v2022_v50  ;;  %vm232_vm14 = vcmp.lt.f32.partialorder %v2012_v48, %v2155_v28  ;;  %v2230_v11 = vld [vmem:[%s3074_s2 + $0x12] ss:$0 sm:$0xff] }
 0x149   :  { %v438_v41 = vadd.f32 %v434_v34, %v430_v30  ;;  %v656_v42 = vmul.f32 %v648_v31, %v400_v33  ;;  %v682_v43 = vmul.f32 %v669_v32, %v400_v33  ;;  %vm236_vm15 = vmand %vm224_vm13, %vm232_vm14  ;;  %vm245_vm0 = vcmp.ge.f32.partialorder %v2012_v48, %v2155_v28  ;;  %v2245_v30 = vld [vmem:[%s3075_s3 + $0x5] ss:$0 sm:$0xff]  ;;  %v2250_v31 = vld [vmem:[%s3075_s3 + $0x12] ss:$0 sm:$0xff] }
 0x14a   :  { %v240_v16 = vsel %vm236_vm15, 1.0, %v3079_v55  ;;  %vm253_vm1 = vcmp.lt.f32.partialorder %v2012_v48, %v2166_v37  ;;  %vm266_vm2 = vcmp.ge.f32.partialorder %v2012_v48, %v2166_v37  ;;  %vm274_vm3 = vcmp.lt.f32.partialorder %v2012_v48, %v2171_v38 }
 0x14b   :  { %v660_v57 = vadd.f32 %v656_v42, %v652_v39  ;;  %v686_v58 = vmul.f32 %v678_v35, %v438_v41  ;;  %vm257_vm4 = vmand %vm245_vm0, %vm253_vm1  ;;  %v442_v61 = vsub.f32 %v2012_v48, %v2017_v49  ;;  %v455_v63 = vsub.f32 %v2155_v28, %v2012_v48  ;;  %v2265_v39 = vld [vmem:[%s3075_s3 + $0x13] ss:$0 sm:$0xff] }
 0x14c   :  { %v261_v2 = vsel %vm257_vm4, 1.0, %v3079_v55  ;;  %vm278_vm5 = vmand %vm266_vm2, %vm274_vm3  ;;  %v2219_v6 = vsub.f32 %v2012_v48, %v2022_v50  ;;  %v493_v8 = vsub.f32 %v2166_v37, %v2012_v48  ;;  %v2225_v9 = vsub.f32 %v2012_v48, %v2155_v28 }
 0x14d   :  { %v690_v15 = vadd.f32 %v686_v58, %v682_v43  ;;  %v864_v18 = vmul.f32 %v850_v36, %v660_v57  ;;  %v2233_v19 = vsel %vm278_vm5, 1.0, %v3079_v55  ;;  %v451_v24 = vmul.f32 %v2183_v44, %v442_v61  ;;  %v2260_v36 = vld [vmem:[%s3074_s2 + $0x13] ss:$0 sm:$0xff]  ;;  %v1605_v57 = vld [vmem:[%s3074_s2 + $0x14] ss:$0 sm:$0xff] }
 0x14e   :  { %3129 = vst [vmem:[#allocation16_spill] sm:$0xff] %v2219_v6  ;;  %3130 = vst [vmem:[#allocation17_spill] sm:$0xff] %v2225_v9  ;;  %v464_v25 = vmul.f32 %v2195_v53, %v455_v63  ;;  %v489_v23 = vmul.f32 %v2200_v56, %v2219_v6  ;;  %v502_v26 = vmul.f32 %v2209_v0, %v493_v8  ;;  %v1607_v58 = vld [vmem:[%s3075_s3 + $0x14] ss:$0 sm:$0xff] }
 0x14f   :  { %3131 = vst [vmem:[#allocation18_spill] sm:$0xff] %v2233_v19  ;;  %v527_v29 = vmul.f32 %v2214_v1, %v2225_v9  ;;  %v868_v32 = vmul.f32 %v860_v40, %v690_v15  ;;  %v468_v33 = vmul.f32 %v451_v24, %v2113_v7  ;;  %v531_v34 = vsub.f32 %v2171_v38, %v2012_v48  ;;  %v2276_v24 = vld [vmem:[%s3074_s2 + $0x22] ss:$0 sm:$0xff] }
 0x150   :  { %v699_v35 = vmul.f32 %v2230_v11, %v2100_v3  ;;  %v472_v42 = vmul.f32 %v464_v25, %v240_v16  ;;  %v506_v40 = vmul.f32 %v489_v23, %v240_v16  ;;  %v510_v43 = vmul.f32 %v502_v26, %v261_v2 }
 0x151   :  { %v544_v7 = vmul.f32 %v527_v29, %v261_v2  ;;  %v872_v55 = vadd.f32 %v868_v32, %v864_v18  ;;  %v540_v27 = vmul.f32 %v2245_v30, %v531_v34  ;;  %v708_v16 = vmul.f32 %v2250_v31, %v455_v63  ;;  %v2283_v2 = vld [vmem:[%s3075_s3 + $0x22] ss:$0 sm:$0xff]  ;;  %v1629_v18 = vld [vmem:[%s3074_s2 + $0x23] ss:$0 sm:$0xff] }
 0x152   :  { %v712_v25 = vmul.f32 %v699_v35, %v438_v41  ;;  %v476_v23 = vadd.f32 %v472_v42, %v468_v33  ;;  %v514_v26 = vadd.f32 %v510_v43, %v506_v40  ;;  %v729_v29 = vmul.f32 %v2260_v36, %v442_v61  ;;  %v1631_v32 = vld [vmem:[%s3075_s3 + $0x23] ss:$0 sm:$0xff]  ;;  %v2300_v42 = vld [vmem:[%s3074_s2 + $0x21] ss:$0 sm:$0xff] }
 0x153   :  { %v738_v21 = vmul.f32 %v2265_v39, %v493_v8  ;;  %1261 = vmatprep.mubr.f32.mxu0 %v872_v55  ;;  %v548_v41 = vmul.f32 %v540_v27, %v2233_v19  ;;  %v759_v35 = vmul.f32 %v1605_v57, %v2219_v6  ;;  %v768_v12 = vmul.f32 %v1607_v58, %v531_v34  ;;  %v2305_v40 = vld [vmem:[%s3075_s3 + $0x21] ss:$0 sm:$0xff] }
 0x154   :  { %v911_v33 = vmul.f32 %v2276_v24, %v2100_v3  ;;  %v716_v43 = vmul.f32 %v708_v16, %v476_v23  ;;  %v742_v55 = vmul.f32 %v729_v29, %v476_v23  ;;  %v920_v27 = vmul.f32 %v2283_v2, %v493_v8 }
 0x155   :  { %v746_v5 = vmul.f32 %v738_v21, %v514_v26  ;;  %v2308_v57 = vadd.f32 %v548_v41, %v544_v7  ;;  %v772_v58 = vmul.f32 %v759_v35, %v514_v26  ;;  %v941_v6 = vmul.f32 %v1629_v18, %v442_v61  ;;  %v1187_v41 = vld [vmem:[#allocation3 + $0x368] sm:$0xff] }
 0x156   :  { %v950_v3 = vmul.f32 %v1631_v32, %v531_v34  ;;  %v720_v52 = vadd.f32 %v716_v43, %v712_v25  ;;  %v881_v45 = vmul.f32 %v2300_v42, %v2080_v62  ;;  %v890_v19 = vmul.f32 %v2305_v40, %v455_v63 }
 0x157   :  { %v750_v51 = vadd.f32 %v746_v5, %v742_v55  ;;  %v776_v9 = vmul.f32 %v768_v12, %v2308_v57  ;;  %vm183_vm6 = vcmp.ge.f32.partialorder %v2051_v54, %v2009_v47  ;;  %vm191_vm7 = vcmp.lt.f32.partialorder %v2051_v54, %v2017_v49 }
 0x158   :  { %vm204_vm8 = vcmp.ge.f32.partialorder %v2051_v54, %v2017_v49  ;;  %v924_v21 = vmul.f32 %v911_v33, %v720_v52  ;;  %v894_v5 = vmul.f32 %v881_v45, %v690_v15  ;;  %vm195_vm9 = vmand %vm183_vm6, %vm191_vm7  ;;  %v898_v62 = vmul.f32 %v890_v19, %v720_v52 }
 0x159   :  { %v928_v61 = vmul.f32 %v920_v27, %v750_v51  ;;  %v954_v8 = vmul.f32 %v941_v6, %v750_v51  ;;  %v2320_v34 = vadd.f32 %v776_v9, %v772_v58  ;;  %v3133_v63 = vmov 0.0   ;;  %v1188_v6 = vld [vmem:[#allocation3 + $0x370] sm:$0xff] }
 0x15a   :  { %v2323_v7 = vsel %vm195_vm9, 1.0, %v3133_v63  ;;  %vm212_vm10 = vcmp.lt.f32.partialorder %v2051_v54, %v2022_v50  ;;  %vm225_vm12 = vcmp.ge.f32.partialorder %v2051_v54, %v2022_v50  ;;  %vm233_vm13 = vcmp.lt.f32.partialorder %v2051_v54, %v2155_v28 }
 0x15b   :  { %3132 = vst [vmem:[#allocation19_spill] sm:$0xff] %v2320_v34  ;;  %v932_v12 = vadd.f32 %v928_v61, %v924_v21  ;;  %vm216_vm11 = vmand %vm204_vm8, %vm212_vm10  ;;  %vm246_vm14 = vcmp.ge.f32.partialorder %v2051_v54, %v2155_v28  ;;  %v958_v45 = vmul.f32 %v950_v3, %v2320_v34  ;;  %v902_v51 = vadd.f32 %v898_v62, %v894_v5  ;;  %v1186_v21 = vld [vmem:[#allocation3 + $0x360] sm:$0xff] }
 0x15c   :  { %v220_v52 = vsel %vm216_vm11, 1.0, %v3133_v63  ;;  %vm237_vm15 = vmand %vm225_vm12, %vm233_vm13  ;;  %vm254_vm0 = vcmp.lt.f32.partialorder %v2051_v54, %v2166_v37  ;;  %vm267_vm2 = vcmp.ge.f32.partialorder %v2051_v54, %v2166_v37  ;;  %vm275_vm3 = vcmp.lt.f32.partialorder %v2051_v54, %v2171_v38 }
 0x15d   :  { %1346 = vmatprep.mubr.f32.mxu1 %v932_v12  ;;  %v241_v9 = vsel %vm237_vm15, 1.0, %v3133_v63  ;;  %vm258_vm1 = vmand %vm246_vm14, %vm254_vm0  ;;  %v405_v15 = vsub.f32 %v2051_v54, %v2009_v47  ;;  %v2344_v19 = vadd.f32 %v958_v45, %v954_v8  ;;  %v2349_v25 = vsub.f32 %v2022_v50, %v2051_v54 }
 0x15e   :  { %1347 = vmatmul.mubr.f32.vlgmr.msra.gmra.mxu1 %v902_v51  ;;  %v262_v16 = vsel %vm258_vm1, 1.0, %v3133_v63  ;;  %vm279_vm4 = vmand %vm267_vm2, %vm275_vm3  ;;  %v2353_v23 = vsub.f32 %v2051_v54, %v2017_v49  ;;  %v456_v18 = vsub.f32 %v2155_v28, %v2051_v54  ;;  %v2364_v32 = vsub.f32 %v2051_v54, %v2022_v50 }
 0x15f   :  { %3134 = vst [vmem:[#allocation20_spill] sm:$0xff] %v2344_v19  ;;  %3135 = vst [vmem:[#allocation21_spill] sm:$0xff] %v2349_v25  ;;  %1794 = vmatpush3.msra.mxu1 %v1993_v10  ;;  %v2357_v26 = vsel %vm279_vm4, 1.0, %v3133_v63  ;;  %v414_v29 = vmul.f32 %v2087_v17, %v405_v15  ;;  %v427_v35 = vmul.f32 %v2105_v4, %v2349_v25 }
 0x160   :  { %3136 = vst [vmem:[#allocation22_spill] sm:$0xff] %v2353_v23  ;;  %3137 = vst [vmem:[#allocation23_spill] sm:$0xff] %v2357_v26  ;;  %1795 = vmatprep.subr.mxu1 %v1188_v6  ;;  %v452_v10 = vmul.f32 %v2183_v44, %v2353_v23  ;;  %v494_v33 = vsub.f32 %v2166_v37, %v2051_v54  ;;  %v2374_v43 = vsub.f32 %v2051_v54, %v2155_v28 }
 0x161   :  { %3138 = vst [vmem:[#allocation24_spill] sm:$0xff] %v2364_v32  ;;  %1796 = vmatpush3.msra.mxu1 %v1188_v6  ;;  %v431_v55 = vmul.f32 %v414_v29, %v2323_v7  ;;  %v465_v27 = vmul.f32 %v2195_v53, %v456_v18  ;;  %v490_v58 = vmul.f32 %v2200_v56, %v2364_v32  ;;  %v1185_v29 = vld [vmem:[#allocation3 + $0x358] sm:$0xff] }
 0x162   :  { %3139 = vst [vmem:[#allocation25_spill] sm:$0xff] %v2374_v43  ;;  %v2382_v3 = vsub.f32 %v2171_v38, %v2051_v54  ;;  %v435_v61 = vmul.f32 %v427_v35, %v220_v52  ;;  %v469_v8 = vmul.f32 %v452_v10, %v220_v52  ;;  %v503_v5 = vmul.f32 %v2209_v0, %v494_v33 }
 0x163   :  { %v528_v62 = vmul.f32 %v2214_v1, %v2374_v43  ;;  %1797 = vmatprep.subr.mxu1 %v1187_v41  ;;  %v473_v12 = vmul.f32 %v465_v27, %v241_v9  ;;  %v507_v45 = vmul.f32 %v490_v58, %v241_v9  ;;  %v700_v6 = vmul.f32 %v2230_v11, %v405_v15 }
 0x164   :  { %3140 = vst [vmem:[#allocation26_spill] sm:$0xff] %v2382_v3  ;;  %v541_v51 = vmul.f32 %v2245_v30, %v2382_v3  ;;  %1798 = vmatpush3.msra.mxu1 %v1187_v41  ;;  %v439_v19 = vadd.f32 %v435_v61, %v431_v55  ;;  %v511_v32 = vmul.f32 %v503_v5, %v262_v16  ;;  %v1184_v30 = vld [vmem:[#allocation3 + $0x350] sm:$0xff]  ;;  %v1183_v5 = vld [vmem:[#allocation3 + $0x348] sm:$0xff] }
 0x165   :  { %v545_v34 = vmul.f32 %v528_v62, %v262_v16  ;;  %v709_v52 = vmul.f32 %v2250_v31, %v456_v18  ;;  %1799 = vmatprep.subr.mxu1 %v1186_v21  ;;  %v477_v35 = vadd.f32 %v473_v12, %v469_v8  ;;  %v730_v1 = vmul.f32 %v2260_v36, %v2353_v23  ;;  %v1182_v12 = vld [vmem:[#allocation3 + $0x340] sm:$0xff] }
 0x166   :  { %v549_v10 = vmul.f32 %v541_v51, %v2357_v26  ;;  %v739_v9 = vmul.f32 %v2265_v39, %v494_v33  ;;  %1800 = vmatpush3.msra.mxu1 %v1186_v21  ;;  %v2395_v27 = vadd.f32 %v511_v32, %v507_v45  ;;  %v713_v41 = vmul.f32 %v700_v6, %v439_v19 }
 0x167   :  { %v912_v55 = vmul.f32 %v2276_v24, %v405_v15  ;;  %v921_v16 = vmul.f32 %v2283_v2, %v494_v33  ;;  %1801 = vmatprep.subr.mxu1 %v1185_v29  ;;  %v717_v61 = vmul.f32 %v709_v52, %v477_v35  ;;  %v743_v8 = vmul.f32 %v730_v1, %v477_v35  ;;  %v1181_v1 = vld [vmem:[#allocation3 + $0x338] sm:$0xff] }
 0x168   :  { %3141 = vst [vmem:[#allocation27_spill] sm:$0xff] %v2395_v27  ;;  %v2399_v58 = vadd.f32 %v549_v10, %v545_v34  ;;  %vm162_vm5 = vcmp.ge.f32.partialorder %v2051_v54, %v2004_v46  ;;  %1802 = vmatpush3.msra.mxu1 %v1185_v29  ;;  %v747_v21 = vmul.f32 %v739_v9, %v2395_v27 }
 0x169   :  { %vm170_vm6 = vcmp.lt.f32.partialorder %v2051_v54, %v2009_v47  ;;  %v367_v15 = vsub.f32 %v2051_v54, %v2004_v46  ;;  %v2410_v32 = vsub.f32 %v2017_v49, %v2051_v54  ;;  %1803 = vmatprep.subr.mxu1 %v1184_v30  ;;  %v721_v34 = vadd.f32 %v717_v61, %v713_v41 }
 0x16a   :  { %3142 = vst [vmem:[#allocation28_spill] sm:$0xff] %v2399_v58  ;;  %vm174_vm7 = vmand %vm162_vm5, %vm170_vm6  ;;  %v679_v33 = vmul.f32 %v2138_v20, %v2349_v25  ;;  %v891_v62 = vmul.f32 %v2305_v40, %v456_v18  ;;  %vm184_vm8 = vcmp.ge.f32.partialorder %v2069_v60, %v2009_v47  ;;  %1804 = vmatpush3.msra.mxu1 %v1184_v30 }
 0x16b   :  { %v2417_v45 = vadd.f32 %v747_v21, %v743_v8  ;;  %v2420_v51 = vsel %vm174_vm7, 1.0, %v3133_v63  ;;  %v376_v6 = vmul.f32 %v2061_v59, %v367_v15  ;;  %v389_v29 = vmul.f32 %v2066_v22, %v2410_v32  ;;  %1805 = vmatprep.subr.mxu1 %v1183_v5  ;;  %v1179_v21 = vld [vmem:[#allocation3 + $0x328] sm:$0xff] }
 0x16c   :  { %v925_v52 = vmul.f32 %v912_v55, %v721_v34  ;;  %v670_v35 = vmul.f32 %v2128_v13, %v367_v15  ;;  %v687_v18 = vmul.f32 %v679_v33, %v439_v19  ;;  %v882_v10 = vmul.f32 %v2300_v42, %v367_v15  ;;  %1806 = vmatpush3.msra.mxu1 %v1183_v5  ;;  %v1180_v19 = vld [vmem:[#allocation3 + $0x330] sm:$0xff] }
 0x16d   :  { %3143 = vst [vmem:[#allocation29_spill] sm:$0xff] %v2417_v45  ;;  %v929_v9 = vmul.f32 %v921_v16, %v2417_v45  ;;  %v393_v30 = vmul.f32 %v376_v6, %v2420_v51  ;;  %v397_v41 = vmul.f32 %v389_v29, %v2323_v7  ;;  %v899_v61 = vmul.f32 %v891_v62, %v721_v34 }
 0x16e   :  { %1807 = vmatprep.subr.mxu1 %v1182_v12  ;;  %vm192_vm9 = vcmp.lt.f32.partialorder %v2069_v60, %v2017_v49  ;;  %vm205_vm10 = vcmp.ge.f32.partialorder %v2069_v60, %v2017_v49  ;;  %vm213_vm11 = vcmp.lt.f32.partialorder %v2069_v60, %v2022_v50  ;;  %vm226_vm12 = vcmp.ge.f32.partialorder %v2069_v60, %v2022_v50 }
 0x16f   :  { %1808 = vmatpush3.msra.mxu1 %v1182_v12  ;;  %v933_v55 = vadd.f32 %v929_v9, %v925_v52  ;;  %v2438_v16 = vadd.f32 %v397_v41, %v393_v30  ;;  %vm196_vm13 = vmand %vm184_vm8, %vm192_vm9  ;;  %vm234_vm14 = vcmp.lt.f32.partialorder %v2069_v60, %v2155_v28  ;;  %vm247_vm15 = vcmp.ge.f32.partialorder %v2069_v60, %v2155_v28 }
 0x170   :  { %1809 = vmatprep.subr.mxu1 %v1181_v1  ;;  %v2448_v7 = vsel %vm196_vm13, 1.0, %v3133_v63  ;;  %vm217_vm0 = vmand %vm205_vm10, %vm213_vm11  ;;  %vm255_vm1 = vcmp.lt.f32.partialorder %v2069_v60, %v2166_v37  ;;  %v406_v8 = vsub.f32 %v2069_v60, %v2009_v47  ;;  %v2456_v5 = vsub.f32 %v2022_v50, %v2069_v60 }
 0x171   :  { %3144 = vst [vmem:[#allocation30_spill] sm:$0xff] %v2438_v16  ;;  %1810 = vmatpush3.msra.mxu1 %v1181_v1  ;;  %1351 = vmatprep.mubr.f32.mxu1 %v933_v55  ;;  %v683_v15 = vmul.f32 %v670_v35, %v2438_v16  ;;  %v221_v34 = vsel %vm217_vm0, 1.0, %v3133_v63  ;;  %vm238_vm2 = vmand %vm226_vm12, %vm234_vm14  ;;  %v2465_v33 = vsub.f32 %v2069_v60, %v2017_v49  ;;  %v1178_v35 = vld [vmem:[#allocation3 + $0x320] sm:$0xff] }
 0x172   :  { %v457_v62 = vsub.f32 %v2155_v28, %v2069_v60  ;;  %1811 = vmatprep.subr.mxu1 %v1180_v19  ;;  %v242_v12 = vsel %vm238_vm2, 1.0, %v3133_v63  ;;  %vm259_vm3 = vmand %vm247_vm15, %vm255_vm1  ;;  %v415_v6 = vmul.f32 %v2087_v17, %v406_v8  ;;  %v428_v29 = vmul.f32 %v2105_v4, %v2456_v5 }
 0x173   :  { %3145 = vst [vmem:[#allocation31_spill] sm:$0xff] %v2465_v33  ;;  %v2478_v52 = vsub.f32 %v2069_v60, %v2022_v50  ;;  %1812 = vmatpush3.msra.mxu1 %v1180_v19  ;;  %v2480_v1 = vadd.f32 %v687_v18, %v683_v15  ;;  %v2483_v9 = vsel %vm259_vm3, 1.0, %v3133_v63  ;;  %v453_v30 = vmul.f32 %v2183_v44, %v2465_v33  ;;  %v1177_v18 = vld [vmem:[#allocation3 + $0x318] sm:$0xff] }
 0x174   :  { %v466_v41 = vmul.f32 %v2195_v53, %v457_v62  ;;  %1813 = vmatprep.subr.mxu1 %v1179_v21  ;;  %v432_v55 = vmul.f32 %v415_v6, %v2448_v7  ;;  %v436_v45 = vmul.f32 %v428_v29, %v221_v34  ;;  %v495_v19 = vsub.f32 %v2166_v37, %v2069_v60 }
 0x175   :  { %3146 = vst [vmem:[#allocation32_spill] sm:$0xff] %v2478_v52  ;;  %v491_v23 = vmul.f32 %v2200_v56, %v2478_v52  ;;  %1814 = vmatpush3.msra.mxu1 %v1179_v21  ;;  %v895_v15 = vmul.f32 %v882_v10, %v2480_v1  ;;  %v470_v27 = vmul.f32 %v453_v30, %v221_v34  ;;  %v1176_v10 = vld [vmem:[#allocation3 + $0x310] sm:$0xff] }
 0x176   :  { %v474_v3 = vmul.f32 %v466_v41, %v242_v12  ;;  %v701_v58 = vmul.f32 %v2230_v11, %v406_v8  ;;  %1815 = vmatprep.subr.mxu1 %v1178_v35  ;;  %v440_v26 = vadd.f32 %v436_v45, %v432_v55  ;;  %v504_v43 = vmul.f32 %v2209_v0, %v495_v19 }
 0x177   :  { %v508_v6 = vmul.f32 %v491_v23, %v242_v12  ;;  %v710_v29 = vmul.f32 %v2250_v31, %v457_v62  ;;  %1816 = vmatpush3.msra.mxu1 %v1178_v35  ;;  %v903_v52 = vadd.f32 %v899_v61, %v895_v15  ;;  %v731_v21 = vmul.f32 %v2260_v36, %v2465_v33  ;;  %v1174_v35 = vld [vmem:[#allocation3 + $0x300] sm:$0xff] }
 0x178   :  { %v478_v16 = vadd.f32 %v474_v3, %v470_v27  ;;  %v740_v25 = vmul.f32 %v2265_v39, %v495_v19  ;;  %1817 = vmatprep.subr.mxu1 %v1177_v18  ;;  %v512_v34 = vmul.f32 %v504_v43, %v2483_v9  ;;  %v714_v30 = vmul.f32 %v701_v58, %v440_v26  ;;  %v1175_v3 = vld [vmem:[#allocation3 + $0x308] sm:$0xff] }
 0x179   :  { %v913_v45 = vmul.f32 %v2276_v24, %v406_v8  ;;  %v922_v41 = vmul.f32 %v2283_v2, %v495_v19  ;;  %1818 = vmatpush3.msra.mxu1 %v1177_v18  ;;  %vm163_vm4 = vcmp.ge.f32.partialorder %v2069_v60, %v2004_v46  ;;  %vm171_vm5 = vcmp.lt.f32.partialorder %v2069_v60, %v2009_v47 }
 0x17a   :  { %1352 = vmatmul.mubr.f32.gmra.mxu1 %v903_v52  ;;  %v718_v23 = vmul.f32 %v710_v29, %v478_v16  ;;  %v744_v12 = vmul.f32 %v731_v21, %v478_v16  ;;  %v2507_v27 = vadd.f32 %v512_v34, %v508_v6  ;;  %vm175_vm6 = vmand %vm163_vm4, %vm171_vm5  ;;  %v368_v43 = vsub.f32 %v2069_v60, %v2004_v46 }
 0x17b   :  { %v2513_v58 = vsub.f32 %v2017_v49, %v2069_v60  ;;  %v680_v61 = vmul.f32 %v2138_v20, %v2456_v5  ;;  %1819 = vmatprep.subr.mxu1 %v1176_v10  ;;  %v2518_v8 = vsel %vm175_vm6, 1.0, %v3133_v63  ;;  %v892_v52 = vmul.f32 %v2305_v40, %v457_v62 }
 0x17c   :  { %v722_v16 = vadd.f32 %v718_v23, %v714_v30  ;;  %vm185_vm7 = vcmp.ge.f32.partialorder %v2131_v14, %v2009_v47  ;;  %1820 = vmatpush3.msra.mxu1 %v1176_v10  ;;  %v748_v55 = vmul.f32 %v740_v25, %v2507_v27  ;;  %v377_v19 = vmul.f32 %v2061_v59, %v368_v43 }
 0x17d   :  { %v390_v18 = vmul.f32 %v2066_v22, %v2513_v58  ;;  %v671_v15 = vmul.f32 %v2128_v13, %v368_v43  ;;  %1821 = vmatprep.subr.mxu1 %v1175_v3  ;;  %v688_v29 = vmul.f32 %v680_v61, %v440_v26  ;;  %v883_v21 = vmul.f32 %v2300_v42, %v368_v43 }
 0x17e   :  { %v926_v6 = vmul.f32 %v913_v45, %v722_v16  ;;  %v900_v62 = vmul.f32 %v892_v52, %v722_v16  ;;  %1822 = vmatpush3.msra.mxu1 %v1175_v3  ;;  %v2529_v34 = vadd.f32 %v748_v55, %v744_v12  ;;  %v394_v10 = vmul.f32 %v377_v19, %v2518_v8 }
 0x17f   :  { %v398_v25 = vmul.f32 %v390_v18, %v2448_v7  ;;  %vm193_vm8 = vcmp.lt.f32.partialorder %v2131_v14, %v2017_v49  ;;  %1823 = vmatprep.subr.mxu1 %v1174_v35  ;;  %vm206_vm10 = vcmp.ge.f32.partialorder %v2131_v14, %v2017_v49  ;;  %vm214_vm11 = vcmp.lt.f32.partialorder %v2131_v14, %v2022_v50 }
 0x180   :  { %3147 = vst [vmem:[#allocation33_spill] sm:$0xff] %v2529_v34  ;;  %vm197_vm9 = vmand %vm185_vm7, %vm193_vm8  ;;  %vm227_vm12 = vcmp.ge.f32.partialorder %v2131_v14, %v2022_v50  ;;  %vm235_vm13 = vcmp.lt.f32.partialorder %v2131_v14, %v2155_v28  ;;  %1824 = vmatpush3.msra.mxu1 %v1174_v35  ;;  %v930_v26 = vmul.f32 %v922_v41, %v2529_v34 }
 0x181   :  { %v2547_v7 = vadd.f32 %v398_v25, %v394_v10  ;;  %v2550_v30 = vsel %vm197_vm9, 1.0, %v3133_v63  ;;  %vm218_vm14 = vmand %vm206_vm10, %vm214_vm11  ;;  %vm248_vm15 = vcmp.ge.f32.partialorder %v2131_v14, %v2155_v28  ;;  %vm256_vm1 = vcmp.lt.f32.partialorder %v2131_v14, %v2166_v37 }
 0x182   :  { %v222_v45 = vsel %vm218_vm14, 1.0, %v3133_v63  ;;  %vm239_vm0 = vmand %vm227_vm12, %vm235_vm13  ;;  %v407_v23 = vsub.f32 %v2131_v14, %v2009_v47  ;;  %v2561_v41 = vsub.f32 %v2022_v50, %v2131_v14  ;;  %v934_v12 = vadd.f32 %v930_v26, %v926_v6 }
 0x183   :  { %v684_v3 = vmul.f32 %v671_v15, %v2547_v7  ;;  %v243_v43 = vsel %vm239_vm0, 1.0, %v3133_v63  ;;  %vm260_vm2 = vmand %vm248_vm15, %vm256_vm1  ;;  %v2567_v61 = vsub.f32 %v2131_v14, %v2017_v49  ;;  %v458_v55 = vsub.f32 %v2155_v28, %v2131_v14 }
 0x184   :  { %v2570_v16 = vsel %vm260_vm2, 1.0, %v3133_v63  ;;  %v416_v52 = vmul.f32 %v2087_v17, %v407_v23  ;;  %v429_v35 = vmul.f32 %v2105_v4, %v2561_v41  ;;  %1356 = vmatprep.mubr.f32.mxu1 %v934_v12  ;;  %v2583_v15 = vsub.f32 %v2131_v14, %v2022_v50 }
 0x185   :  { %3148 = vst [vmem:[#allocation34_spill] sm:$0xff] %v2567_v61  ;;  %v2577_v19 = vadd.f32 %v688_v29, %v684_v3  ;;  %v454_v18 = vmul.f32 %v2183_v44, %v2567_v61  ;;  %v496_v6 = vsub.f32 %v2166_v37, %v2131_v14  ;;  %v467_v4 = vmul.f32 %v2195_v53, %v458_v55 }
 0x186   :  { %3149 = vst [vmem:[#allocation35_spill] sm:$0xff] %v2583_v15  ;;  %v433_v17 = vmul.f32 %v416_v52, %v2550_v30  ;;  %v437_v10 = vmul.f32 %v429_v35, %v222_v45  ;;  %v702_v28 = vmul.f32 %v2230_v11, %v407_v23  ;;  %v492_v44 = vmul.f32 %v2200_v56, %v2583_v15 }
 0x187   :  { %v896_v29 = vmul.f32 %v883_v21, %v2577_v19  ;;  %v471_v25 = vmul.f32 %v454_v18, %v222_v45  ;;  %v505_v26 = vmul.f32 %v2209_v0, %v496_v6  ;;  %v475_v12 = vmul.f32 %v467_v4, %v243_v43  ;;  %v2632_v4 = vld [vmem:[%s3073_s1 + $0x9] ss:$0 sm:$0xff] }
 0x188   :  { %v441_v50 = vadd.f32 %v437_v10, %v433_v17  ;;  %v711_v3 = vmul.f32 %v2250_v31, %v458_v55  ;;  %v732_v52 = vmul.f32 %v2260_v36, %v2567_v61  ;;  %v509_v34 = vmul.f32 %v492_v44, %v243_v43 }
 0x189   :  { %v904_v35 = vadd.f32 %v900_v62, %v896_v29  ;;  %v513_v53 = vmul.f32 %v505_v26, %v2570_v16  ;;  %v741_v11 = vmul.f32 %v2265_v39, %v496_v6  ;;  %v479_v21 = vadd.f32 %v475_v12, %v471_v25  ;;  %v2668_v26 = vld [vmem:[%s3075_s3 + $0x7] ss:$0 sm:$0xff] }
 0x18a   :  { %v715_v45 = vmul.f32 %v702_v28, %v441_v50  ;;  %v914_v18 = vmul.f32 %v2276_v24, %v407_v23  ;;  %v923_v56 = vmul.f32 %v2283_v2, %v496_v6  ;;  %vm164_vm3 = vcmp.ge.f32.partialorder %v2131_v14, %v2004_v46  ;;  %v2624_v6 = vld [vmem:[%s3073_s1 + $0x8] ss:$0 sm:$0xff] }
 0x18b   :  { %1357 = vmatmul.mubr.f32.gmra.mxu1 %v904_v35  ;;  %v2601_v0 = vadd.f32 %v513_v53, %v509_v34  ;;  %vm172_vm4 = vcmp.lt.f32.partialorder %v2131_v14, %v2009_v47  ;;  %v369_v31 = vsub.f32 %v2131_v14, %v2004_v46  ;;  %v719_v36 = vmul.f32 %v711_v3, %v479_v21  ;;  %v2687_v35 = vld [vmem:[%s3075_s3 + $0x15] ss:$0 sm:$0xff]  ;;  %v2692_v53 = vld [vmem:[%s3074_s2 + $0x16] ss:$0 sm:$0xff] }
 0x18c   :  { %v745_v39 = vmul.f32 %v732_v52, %v479_v21  ;;  %vm176_vm5 = vmand %vm164_vm3, %vm172_vm4  ;;  %v2611_v24 = vsub.f32 %v2017_v49, %v2131_v14  ;;  %v681_v2 = vmul.f32 %v2138_v20, %v2561_v41  ;;  %v893_v28 = vmul.f32 %v2305_v40, %v458_v55  ;;  %v2653_v40 = vld [vmem:[%s3075_s3 + $0x6] ss:$0 sm:$0xff] }
 0x18d   :  { %3150 = vst [vmem:[#allocation36_spill] sm:$0xff] %v2601_v0  ;;  %v749_v62 = vmul.f32 %v741_v11, %v2601_v0  ;;  %v2617_v34 = vsel %vm176_vm5, 1.0, %v3133_v63  ;;  %v378_v23 = vmul.f32 %v2061_v59, %v369_v31  ;;  %v672_v43 = vmul.f32 %v2128_v13, %v369_v31 }
 0x18e   :  { %v723_v17 = vadd.f32 %v719_v36, %v715_v45  ;;  %v391_v49 = vmul.f32 %v2066_v22, %v2611_v24  ;;  %v689_v10 = vmul.f32 %v681_v2, %v441_v50  ;;  %v884_v20 = vmul.f32 %v2300_v42, %v369_v31  ;;  %v2648_v42 = vld [vmem:[%s3074_s2 + $0x6] ss:$0 sm:$0xff]  ;;  %v2673_v50 = vld [vmem:[%s3074_s2 + $0x15] ss:$0 sm:$0xff] }
 0x18f   :  { %v2634_v59 = vadd.f32 %v749_v62, %v745_v39  ;;  %v395_v13 = vmul.f32 %v378_v23, %v2617_v34  ;;  %vm287_vm6 = vcmp.ge.f32.partialorder %v2012_v48, %v2171_v38  ;;  %vm295_vm7 = vcmp.lt.f32.partialorder %v2012_v48, %v2624_v6  ;;  %v3152_v39 = vld [vmem:[#allocation17_spill] sm:$0xff]  ;;  %v2707_v62 = vld [vmem:[%s3075_s3 + $0x16] ss:$0 sm:$0xff] }
 0x190   :  { %v927_v29 = vmul.f32 %v914_v18, %v723_v17  ;;  %v399_v22 = vmul.f32 %v391_v49, %v2550_v30  ;;  %vm308_vm8 = vcmp.ge.f32.partialorder %v2012_v48, %v2624_v6  ;;  %v2658_v30 = vld [vmem:[%s3074_s2 + $0x7] ss:$0 sm:$0xff]  ;;  %v901_v25 = vmul.f32 %v893_v28, %v723_v17  ;;  %vm299_vm9 = vmand %vm287_vm6, %vm295_vm7  ;;  %v2712_v23 = vld [vmem:[%s3074_s2 + $0x25] ss:$0 sm:$0xff] }
 0x191   :  { %3151 = vst [vmem:[#allocation37_spill] sm:$0xff] %v2634_v59  ;;  %v931_v55 = vmul.f32 %v923_v56, %v2634_v59  ;;  %vm316_vm10 = vcmp.lt.f32.partialorder %v2012_v48, %v2632_v4  ;;  %v556_v44 = vsub.f32 %v2012_v48, %v2166_v37  ;;  %v303_v3 = vsel %vm299_vm9, 1.0, %v3133_v63  ;;  %v3153_v17 = vld [vmem:[#allocation18_spill] sm:$0xff] }
 0x192   :  { %v2675_v12 = vadd.f32 %v399_v22, %v395_v13  ;;  %vm320_vm11 = vmand %vm308_vm8, %vm316_vm10  ;;  %v2680_v52 = vsub.f32 %v2624_v6, %v2012_v48  ;;  %v594_v37 = vsub.f32 %v2012_v48, %v2171_v38  ;;  %v607_v18 = vsub.f32 %v2632_v4, %v2012_v48 }
 0x193   :  { %v935_v11 = vadd.f32 %v931_v55, %v927_v29  ;;  %v324_v21 = vsel %vm320_vm11, 1.0, %v3133_v63  ;;  %v565_v45 = vmul.f32 %v2648_v42, %v556_v44  ;;  %v789_v2 = vmul.f32 %v2673_v50, %v3152_v39 }
 0x194   :  { %v685_v56 = vmul.f32 %v672_v43, %v2675_v12  ;;  %v578_v31 = vmul.f32 %v2653_v40, %v2680_v52  ;;  %v603_v36 = vmul.f32 %v2658_v30, %v594_v37  ;;  %v2717_v43 = vld [vmem:[%s3075_s3 + $0x25] ss:$0 sm:$0xff]  ;;  %v616_v13 = vmul.f32 %v2668_v26, %v607_v18 }
 0x195   :  { %1361 = vmatprep.mubr.f32.mxu1 %v935_v11  ;;  %v582_v49 = vmul.f32 %v565_v45, %v3153_v17  ;;  %v798_v28 = vmul.f32 %v2687_v35, %v2680_v52  ;;  %v819_v29 = vmul.f32 %v2692_v53, %v556_v44  ;;  %v802_v59 = vmul.f32 %v789_v2, %v2308_v57  ;;  %v3154_v44 = vld [vmem:[#allocation9_spill] sm:$0xff] }
 0x196   :  { %v2724_v22 = vadd.f32 %v689_v10, %v685_v56  ;;  %v586_v55 = vmul.f32 %v578_v31, %v303_v3  ;;  %v620_v37 = vmul.f32 %v603_v36, %v303_v3  ;;  %v624_v61 = vmul.f32 %v616_v13, %v324_v21  ;;  %v3155_v36 = vld [vmem:[#allocation10_spill] sm:$0xff] }
 0x197   :  { %v828_v33 = vmul.f32 %v2707_v62, %v607_v18  ;;  %v1001_v11 = vmul.f32 %v2712_v23, %v3152_v39  ;;  %v1010_v45 = vmul.f32 %v2717_v43, %v607_v18  ;;  %v1558_v15 = vmul.f32 -1.442695, %v2012_v48 }
 0x198   :  { %v897_v17 = vmul.f32 %v884_v20, %v2724_v22  ;;  %v590_v0 = vadd.f32 %v586_v55, %v582_v49  ;;  %vm141_vm12 = vcmp.ge.f32.partialorder %v2051_v54, %v3154_v44  ;;  %v628_v10 = vadd.f32 %v624_v61, %v620_v37  ;;  %v3156_v61 = vld [vmem:[#allocation11_spill] sm:$0xff]  ;;  %v3157_v49 = vld [vmem:[#allocation12_spill] sm:$0xff]  ;;  %v3158_v55 = vld [vmem:[#allocation13_spill] sm:$0xff] }
 0x199   :  { %vm149_vm13 = vcmp.lt.f32.partialorder %v2051_v54, %v2004_v46  ;;  %v329_v57 = vsub.f32 %v2051_v54, %v3154_v44  ;;  %v342_v3 = vsub.f32 %v2009_v47, %v2051_v54  ;;  %1844 = vpow2.f32 %v1558_v15  ;;  %v3161_v37 = vld [vmem:[#allocation15_spill] sm:$0xff] }
 0x19a   :  { %v905_v21 = vadd.f32 %v901_v25, %v897_v17  ;;  %v806_v18 = vmul.f32 %v798_v28, %v590_v0  ;;  %v832_v56 = vmul.f32 %v819_v29, %v590_v0  ;;  %vm153_vm14 = vmand %vm141_vm12, %vm149_vm13  ;;  %v836_v20 = vmul.f32 %v828_v33, %v628_v10  ;;  %v3159_v25 = vld [vmem:[#allocation14_spill] sm:$0xff]  ;;  %v3160_v29 = vld [vmem:[#allocation21_spill] sm:$0xff] }
 0x19b   :  { %v157_v31 = vsel %vm153_vm14, 1.0, %v3133_v63  ;;  %v338_v39 = vmul.f32 %v3155_v36, %v329_v57  ;;  %v351_v2 = vmul.f32 %v3156_v61, %v342_v3  ;;  %v639_v13 = vmul.f32 %v3157_v49, %v329_v57  ;;  %v3162_v3 = vld [vmem:[#allocation30_spill] sm:$0xff] }
 0x19c   :  { %1362 = vmatmul.mubr.f32.gmra.mxu1 %v905_v21  ;;  %v2744_v46 = vadd.f32 %v806_v18, %v802_v59  ;;  %v649_v47 = vmul.f32 %v3158_v55, %v2410_v32  ;;  %v851_v28 = vmul.f32 %v3159_v25, %v329_v57  ;;  %v840_v0 = vadd.f32 %v836_v20, %v832_v56 }
 0x19d   :  { %v355_v15 = vmul.f32 %v338_v39, %v157_v31  ;;  %v359_v33 = vmul.f32 %v351_v2, %v2420_v51  ;;  %v861_v17 = vmul.f32 %v3161_v37, %v3160_v29  ;;  %v1559_v59 = vmul.f32 -1.442695, %v2051_v54  ;;  %v1860_v51 = vld [vmem:[%s3073_s1 + $0x1] ss:$0 sm:$0xff] }
 0x19e   :  { %v1014_v10 = vmul.f32 %v1001_v11, %v2744_v46  ;;  %v657_v21 = vmul.f32 %v649_v47, %v3162_v3  ;;  %vm142_vm15 = vcmp.ge.f32.partialorder %v2069_v60, %v3154_v44  ;;  %v1018_v18 = vmul.f32 %v1010_v45, %v840_v0  ;;  %v1861_v11 = vld [vmem:[%s3073_s1] ss:$0 sm:$0xff]  ;;  %v1862_v45 = vld [vmem:[%s3073_s1 + $0x2] ss:$0 sm:$0xff] }
 0x19f   :  { %v363_v32 = vadd.f32 %v359_v33, %v355_v15  ;;  %v869_v57 = vmul.f32 %v861_v17, %v2480_v1  ;;  %vm150_vm0 = vcmp.lt.f32.partialorder %v2069_v60, %v1860_v51  ;;  %1846 = vpow2.f32 %v1559_v59 }
 0x1a0   :  { %vm154_vm1 = vmand %vm142_vm15, %vm150_vm0  ;;  %v330_v56 = vsub.f32 %v2069_v60, %v1861_v11  ;;  %v343_v1 = vsub.f32 %v1862_v45, %v2069_v60  ;;  %v650_v44 = vmul.f32 %v3158_v55, %v2513_v58  ;;  %v1022_v20 = vadd.f32 %v1018_v18, %v1014_v10 }
 0x1a1   :  { %v653_v31 = vmul.f32 %v639_v13, %v363_v32  ;;  %v158_v39 = vsel %vm154_vm1, 1.0, %v3133_v63  ;;  %v862_v2 = vmul.f32 %v3161_v37, %v2456_v5  ;;  %v1560_v13 = vmul.f32 -1.442695, %v2069_v60  ;;  %v1864_v32 = vld [vmem:[%s3075_s3] ss:$0 sm:$0xff] }
 0x1a2   :  { %v339_v47 = vmul.f32 %v3155_v36, %v330_v56  ;;  %v352_v0 = vmul.f32 %v3156_v61, %v343_v1  ;;  %v640_v15 = vmul.f32 %v3157_v49, %v330_v56  ;;  %v658_v33 = vmul.f32 %v650_v44, %v2547_v7  ;;  %1825 = vmatprep.mubr.f32.mxu1 %v1022_v20 }
 0x1a3   :  { %v661_v29 = vadd.f32 %v657_v21, %v653_v31  ;;  %v852_v17 = vmul.f32 %v3159_v25, %v330_v56  ;;  %v870_v58 = vmul.f32 %v862_v2, %v2577_v19  ;;  %vm143_vm2 = vcmp.ge.f32.partialorder %v2131_v14, %v1861_v11  ;;  %v3163_v2 = vld [vmem:[#allocation16_spill] sm:$0xff] }
 0x1a4   :  { %v356_v10 = vmul.f32 %v339_v47, %v158_v39  ;;  %v360_v3 = vmul.f32 %v352_v0, %v2518_v8  ;;  %vm151_vm3 = vcmp.lt.f32.partialorder %v2131_v14, %v1860_v51  ;;  %1848 = vpow2.f32 %v1560_v13 }
 0x1a5   :  { %v865_v5 = vmul.f32 %v851_v28, %v661_v29  ;;  %vm155_vm4 = vmand %vm143_vm2, %vm151_vm3  ;;  %v331_v7 = vsub.f32 %v2131_v14, %v1861_v11  ;;  %v344_v36 = vsub.f32 %v1862_v45, %v2131_v14  ;;  %v651_v19 = vmul.f32 %v3158_v55, %v2611_v24  ;;  %v1863_v28 = vld [vmem:[%s3074_s2] ss:$0 sm:$0xff]  ;;  %v1865_v24 = vld [vmem:[%s3074_s2 + $0x10] ss:$0 sm:$0xff] }
 0x1a6   :  { %v364_v61 = vadd.f32 %v360_v3, %v356_v10  ;;  %v159_v49 = vsel %vm155_vm4, 1.0, %v3133_v63  ;;  %v863_v8 = vmul.f32 %v3161_v37, %v2561_v41  ;;  %v1845_v21 = vpop.eup %1844  ;;  %v2807_v41 = vld [vmem:[%s3074_s2 + $0x24] ss:$0 sm:$0xff]  ;;  %v1561_v31 = vmul.f32 -1.442695, %v2131_v14 }
 0x1a7   :  { %v2793_v59 = vadd.f32 %v869_v57, %v865_v5  ;;  %v340_v18 = vmul.f32 %v1863_v28, %v331_v7  ;;  %v353_v51 = vmul.f32 %v1864_v32, %v344_v36  ;;  %v641_v55 = vmul.f32 %v1865_v24, %v331_v7  ;;  %v2812_v37 = vld [vmem:[%s3075_s3 + $0x24] ss:$0 sm:$0xff] }
 0x1a8   :  { %v111_v57 = vadd.f32 1.0, %v1845_v21  ;;  %v654_v11 = vmul.f32 %v640_v15, %v364_v61  ;;  %v659_v56 = vmul.f32 %v651_v19, %v2675_v12  ;;  %v853_v45 = vmul.f32 %v3159_v25, %v331_v7  ;;  %v3164_v12 = vld [vmem:[#allocation19_spill] sm:$0xff]  ;;  %v2854_v61 = vld [vmem:[%s3073_s1 + $0x7] ss:$0 sm:$0xff] }
 0x1a9   :  { %v357_v1 = vmul.f32 %v340_v18, %v159_v49  ;;  %v361_v44 = vmul.f32 %v353_v51, %v2617_v34  ;;  %v871_v20 = vmul.f32 %v863_v8, %v2724_v22  ;;  %v971_v47 = vmul.f32 %v2807_v41, %v3163_v2  ;;  %v3165_v8 = vld [vmem:[#allocation25_spill] sm:$0xff]  ;;  %v3166_v18 = vld [vmem:[#allocation23_spill] sm:$0xff] }
 0x1aa   :  { %1850 = vrcp.f32 %v111_v57  ;;  %v662_v39 = vadd.f32 %v658_v33, %v654_v11  ;;  %v980_v0 = vmul.f32 %v2812_v37, %v2680_v52  ;;  %vm288_vm5 = vcmp.ge.f32.partialorder %v2051_v54, %v2171_v38  ;;  %v2837_v38 = vld [vmem:[%s3073_s1 + $0x6] ss:$0 sm:$0xff] }
 0x1ab   :  { %v365_v15 = vadd.f32 %v361_v44, %v357_v1  ;;  %1852 = vpow2.f32 %v1561_v31  ;;  %vm296_vm6 = vcmp.lt.f32.partialorder %v2051_v54, %v2624_v6  ;;  %v984_v22 = vmul.f32 %v971_v47, %v3164_v12 }
 0x1ac   :  { %v866_v34 = vmul.f32 %v852_v17, %v662_v39  ;;  %v988_v25 = vmul.f32 %v980_v0, %v2744_v46  ;;  %vm300_vm7 = vmand %vm288_vm5, %vm296_vm6  ;;  %vm309_vm8 = vcmp.ge.f32.partialorder %v2051_v54, %v2624_v6  ;;  %v1847_v33 = vpop.eup %1846  ;;  %vm317_vm9 = vcmp.lt.f32.partialorder %v2051_v54, %v2632_v4 }
 0x1ad   :  { %v655_v29 = vmul.f32 %v641_v55, %v365_v15  ;;  %v304_v52 = vsel %vm300_vm7, 1.0, %v3133_v63  ;;  %v557_v17 = vsub.f32 %v2051_v54, %v2837_v38  ;;  %v112_v46 = vadd.f32 1.0, %v1847_v33  ;;  %vm321_vm10 = vmand %vm309_vm8, %vm317_vm9 }
 0x1ae   :  { %v2841_v13 = vadd.f32 %v870_v58, %v866_v34  ;;  %v2843_v10 = vadd.f32 %v988_v25, %v984_v22  ;;  %v2847_v3 = vsub.f32 %v2624_v6, %v2051_v54  ;;  %v325_v7 = vsel %vm321_vm10, 1.0, %v3133_v63 }
 0x1af   :  { %v663_v5 = vadd.f32 %v659_v56, %v655_v29  ;;  %v566_v36 = vmul.f32 %v2648_v42, %v557_v17  ;;  %v595_v58 = vsub.f32 %v2051_v54, %v2854_v61  ;;  %1854 = vrcp.f32 %v112_v46  ;;  %v3167_v56 = vld [vmem:[#allocation28_spill] sm:$0xff]  ;;  %v2893_v29 = vld [vmem:[%s3073_s1 + $0x5] ss:$0 sm:$0xff] }
 0x1b0   :  { %v579_v49 = vmul.f32 %v2653_v40, %v2847_v3  ;;  %v608_v19 = vsub.f32 %v2632_v4, %v2051_v54  ;;  %v790_v21 = vmul.f32 %v2673_v50, %v3165_v8  ;;  %v799_v24 = vmul.f32 %v2687_v35, %v2847_v3 }
 0x1b1   :  { %v867_v28 = vmul.f32 %v853_v45, %v663_v5  ;;  %v583_v32 = vmul.f32 %v566_v36, %v3166_v18  ;;  %v604_v51 = vmul.f32 %v2658_v30, %v595_v58  ;;  %v1849_v55 = vpop.eup %1848  ;;  %v820_v44 = vmul.f32 %v2692_v53, %v557_v17  ;;  %v1157_v5 = vld [vmem:[#allocation3 + $0x278] sm:$0xff]  ;;  %v1156_v18 = vld [vmem:[#allocation3 + $0x270] sm:$0xff] }
 0x1b2   :  { %v587_v57 = vmul.f32 %v579_v49, %v304_v52  ;;  %v617_v11 = vmul.f32 %v2668_v26, %v608_v19  ;;  %v803_v1 = vmul.f32 %v790_v21, %v3167_v56  ;;  %v113_v31 = vadd.f32 1.0, %v1849_v55  ;;  %v1172_v49 = vld [vmem:[#allocation3 + $0x2f0] sm:$0xff]  ;;  %v2905_v21 = vld [vmem:[%s3074_s2 + $0x5] ss:$0 sm:$0xff] }
 0x1b3   :  { %v2871_v39 = vadd.f32 %v871_v20, %v867_v28  ;;  %v621_v2 = vmul.f32 %v604_v51, %v304_v52  ;;  %v829_v45 = vmul.f32 %v2707_v62, %v608_v19  ;;  %v1002_v15 = vmul.f32 %v2712_v23, %v3165_v8 }
 0x1b4   :  { %v591_v47 = vadd.f32 %v587_v57, %v583_v32  ;;  %v625_v0 = vmul.f32 %v617_v11, %v325_v7  ;;  %v1011_v34 = vmul.f32 %v2717_v43, %v608_v19  ;;  %1856 = vrcp.f32 %v113_v31  ;;  %v1171_v57 = vld [vmem:[#allocation3 + $0x2e8] sm:$0xff]  ;;  %v2923_v11 = vld [vmem:[%s3075_s3 + $0x5] ss:$0 sm:$0xff] }
 0x1b5   :  { %vm268_vm11 = vcmp.ge.f32.partialorder %v2069_v60, %v2837_v38  ;;  %vm276_vm12 = vcmp.lt.f32.partialorder %v2069_v60, %v2854_v61  ;;  %vm289_vm13 = vcmp.ge.f32.partialorder %v2069_v60, %v2854_v61  ;;  %vm297_vm15 = vcmp.lt.f32.partialorder %v2069_v60, %v2624_v6 }
 0x1b6   :  { %v629_v20 = vadd.f32 %v625_v0, %v621_v2  ;;  %v807_v12 = vmul.f32 %v799_v24, %v591_v47  ;;  %v833_v22 = vmul.f32 %v820_v44, %v591_v47  ;;  %vm280_vm14 = vmand %vm268_vm11, %vm276_vm12  ;;  %vm310_vm1 = vcmp.ge.f32.partialorder %v2069_v60, %v2624_v6  ;;  %v1155_v2 = vld [vmem:[#allocation3 + $0x268] sm:$0xff] }
 0x1b7   :  { %v1851_v25 = vpop.eup %1850  ;;  %v284_v33 = vsel %vm280_vm14, 1.0, %v3133_v63  ;;  %vm301_vm0 = vmand %vm289_vm13, %vm297_vm15  ;;  %vm318_vm2 = vcmp.lt.f32.partialorder %v2069_v60, %v2632_v4  ;;  %v520_v52 = vsub.f32 %v2069_v60, %v2893_v29  ;;  %v558_v24 = vsub.f32 %v2069_v60, %v2837_v38 }
 0x1b8   :  { %v1853_v17 = vpop.eup %1852  ;;  %v123_v46 = vmul.f32 %v1851_v25, %v2012_v48  ;;  %v2898_v7 = vadd.f32 %v807_v12, %v803_v1  ;;  %v837_v36 = vmul.f32 %v829_v45, %v629_v20  ;;  %v305_v58 = vsel %vm301_vm0, 1.0, %v3133_v63  ;;  %vm322_vm3 = vmand %vm310_vm1, %vm318_vm2  ;;  %v1170_v20 = vld [vmem:[#allocation3 + $0x2e0] sm:$0xff] }
 0x1b9   :  { %v114_v19 = vadd.f32 1.0, %v1853_v17  ;;  %v326_v8 = vsel %vm322_vm3, 1.0, %v3133_v63  ;;  %v529_v28 = vmul.f32 %v2905_v21, %v520_v52  ;;  %v2910_v48 = vsub.f32 %v2854_v61, %v2069_v60  ;;  %v1154_v17 = vld [vmem:[#allocation3 + $0x260] sm:$0xff] }
 0x1ba   :  { %1262 = vmatmul.mubr.f32.vlgmr.msra.gmra.mxu0 %v123_v46  ;;  %v841_v32 = vadd.f32 %v837_v36, %v833_v22  ;;  %v1015_v51 = vmul.f32 %v1002_v15, %v2898_v7  ;;  %v2917_v55 = vsub.f32 %v2624_v6, %v2069_v60  ;;  %v596_v31 = vsub.f32 %v2069_v60, %v2854_v61 }
 0x1bb   :  { %1730 = vmatpush3.msra.mxu0 %v1157_v5  ;;  %1266 = vmatprep.mubr.f32.mxu0 %v2793_v59  ;;  %1858 = vrcp.f32 %v114_v19  ;;  %v542_v1 = vmul.f32 %v2923_v11, %v2910_v48  ;;  %v546_v44 = vmul.f32 %v529_v28, %v2483_v9  ;;  %v567_v59 = vmul.f32 %v2648_v42, %v558_v24 }
 0x1bc   :  { %1731 = vmatprep.subr.mxu0 %v1172_v49  ;;  %v1019_v45 = vmul.f32 %v1011_v34, %v841_v32  ;;  %v580_v47 = vmul.f32 %v2653_v40, %v2917_v55  ;;  %v609_v0 = vsub.f32 %v2632_v4, %v2069_v60  ;;  %v1855_v15 = vpop.eup %1854  ;;  %v605_v9 = vmul.f32 %v2658_v30, %v596_v31  ;;  %v1169_v49 = vld [vmem:[#allocation3 + $0x2d8] sm:$0xff] }
 0x1bd   :  { %1732 = vmatpush3.msra.mxu0 %v1156_v18  ;;  %v550_v12 = vmul.f32 %v542_v1, %v284_v33  ;;  %v791_v22 = vmul.f32 %v2673_v50, %v520_v52  ;;  %v800_v25 = vmul.f32 %v2687_v35, %v2917_v55  ;;  %v124_v34 = vmul.f32 %v1855_v15, %v2051_v54  ;;  %v1153_v1 = vld [vmem:[#allocation3 + $0x258] sm:$0xff] }
 0x1be   :  { %1733 = vmatprep.subr.mxu0 %v1171_v57  ;;  %v1023_v46 = vadd.f32 %v1019_v45, %v1015_v51  ;;  %v584_v5 = vmul.f32 %v567_v59, %v284_v33  ;;  %v588_v36 = vmul.f32 %v580_v47, %v305_v58  ;;  %v618_v28 = vmul.f32 %v2668_v26, %v609_v0  ;;  %v1168_v33 = vld [vmem:[#allocation3 + $0x2d0] sm:$0xff] }
 0x1bf   :  { %1734 = vmatpush3.msra.mxu0 %v1155_v2  ;;  %v2940_v19 = vadd.f32 %v550_v12, %v546_v44  ;;  %v622_v18 = vmul.f32 %v605_v9, %v305_v58  ;;  %v821_v32 = vmul.f32 %v2692_v53, %v558_v24  ;;  %v830_v57 = vmul.f32 %v2707_v62, %v609_v0  ;;  %v1166_v9 = vld [vmem:[#allocation3 + $0x2c0] sm:$0xff] }
 0x1c0   :  { %1267 = vmatmul.mubr.f32.gmra.mxu0 %v124_v34  ;;  %1735 = vmatprep.subr.mxu0 %v1170_v20  ;;  %v592_v31 = vadd.f32 %v588_v36, %v584_v5  ;;  %v1003_v54 = vmul.f32 %v2712_v23, %v520_v52  ;;  %v626_v51 = vmul.f32 %v618_v28, %v326_v8  ;;  %v1152_v52 = vld [vmem:[#allocation3 + $0x250] sm:$0xff]  ;;  %v1167_v8 = vld [vmem:[#allocation3 + $0x2c8] sm:$0xff]  ;;  %v1165_v28 = vld [vmem:[#allocation3 + $0x2b8] sm:$0xff] }
 0x1c1   :  { %1271 = vmatprep.mubr.f32.mxu0 %v2841_v13  ;;  %1736 = vmatpush3.msra.mxu0 %v1154_v17  ;;  %v804_v44 = vmul.f32 %v791_v22, %v2940_v19  ;;  %v1012_v2 = vmul.f32 %v2717_v43, %v609_v0  ;;  %v1857_v58 = vpop.eup %1856  ;;  %vm269_vm4 = vcmp.ge.f32.partialorder %v2131_v14, %v2837_v38  ;;  %v1150_v17 = vld [vmem:[#allocation3 + $0x240] sm:$0xff] }
 0x1c2   :  { %1737 = vmatprep.subr.mxu0 %v1169_v49  ;;  %1826 = vmatmul.mubr.f32.vlgmr.msra.gmra.mxu1 %v1023_v46  ;;  %v808_v24 = vmul.f32 %v800_v25, %v592_v31  ;;  %v834_v45 = vmul.f32 %v821_v32, %v592_v31  ;;  %v125_v59 = vmul.f32 %v1857_v58, %v2069_v60  ;;  %v1151_v60 = vld [vmem:[#allocation3 + $0x248] sm:$0xff] }
 0x1c3   :  { %1738 = vmatpush3.msra.mxu0 %v1153_v1  ;;  %v630_v13 = vadd.f32 %v626_v51, %v622_v18  ;;  %vm277_vm5 = vcmp.lt.f32.partialorder %v2131_v14, %v2854_v61  ;;  %vm290_vm6 = vcmp.ge.f32.partialorder %v2131_v14, %v2854_v61  ;;  %vm298_vm8 = vcmp.lt.f32.partialorder %v2131_v14, %v2624_v6  ;;  %v1149_v1 = vld [vmem:[#allocation3 + $0x238] sm:$0xff]  ;;  %v1163_v58 = vld [vmem:[#allocation3 + $0x2a8] sm:$0xff] }
 0x1c4   :  { %1739 = vmatprep.subr.mxu0 %v1168_v33  ;;  %v2956_v47 = vadd.f32 %v808_v24, %v804_v44  ;;  %vm281_vm7 = vmand %vm269_vm4, %vm277_vm5  ;;  %vm311_vm9 = vcmp.ge.f32.partialorder %v2131_v14, %v2624_v6  ;;  %vm319_vm10 = vcmp.lt.f32.partialorder %v2131_v14, %v2632_v4  ;;  %1272 = vmatmul.mubr.f32.gmra.mxu0 %v125_v59 }
 0x1c5   :  { %v838_v0 = vmul.f32 %v830_v57, %v630_v13  ;;  %v285_v15 = vsel %vm281_vm7, 1.0, %v3133_v63  ;;  %vm302_vm11 = vmand %vm290_vm6, %vm298_vm8  ;;  %v2967_v20 = vsub.f32 %v2131_v14, %v2893_v29  ;;  %v2971_v12 = vsub.f32 %v2854_v61, %v2131_v14  ;;  %1276 = vmatprep.mubr.f32.mxu0 %v2871_v39  ;;  %1740 = vmatpush3.msra.mxu0 %v1152_v52  ;;  %v1164_v57 = vld [vmem:[#allocation3 + $0x2b0] sm:$0xff] }
 0x1c6   :  { %v1016_v22 = vmul.f32 %v1003_v54, %v2956_v47  ;;  %v306_v25 = vsel %vm302_vm11, 1.0, %v3133_v63  ;;  %vm323_vm12 = vmand %vm311_vm9, %vm319_vm10  ;;  %v559_v34 = vsub.f32 %v2131_v14, %v2837_v38  ;;  %v2980_v29 = vsub.f32 %v2624_v6, %v2131_v14  ;;  %1741 = vmatprep.subr.mxu0 %v1167_v8  ;;  %v1146_v8 = vld [vmem:[#allocation3 + $0x220] sm:$0xff] }
 0x1c7   :  { %v842_v46 = vadd.f32 %v838_v0, %v834_v45  ;;  %v327_v5 = vsel %vm323_vm12, 1.0, %v3133_v63  ;;  %v530_v39 = vmul.f32 %v2905_v21, %v2967_v20  ;;  %v543_v36 = vmul.f32 %v2923_v11, %v2971_v12  ;;  %1742 = vmatpush3.msra.mxu0 %v1151_v60  ;;  %v1147_v45 = vld [vmem:[#allocation3 + $0x228] sm:$0xff]  ;;  %v1871_v60 = vld [vmem:[%s3074_s2 + $0x14] ss:$0 sm:$0xff]  ;;  %v3168_v0 = vld [vmem:[#allocation24_spill] sm:$0xff] }
 0x1c8   :  { %v1859_v49 = vpop.eup %1858  ;;  %v568_v38 = vmul.f32 %v2648_v42, %v559_v34  ;;  %v581_v6 = vmul.f32 %v2653_v40, %v2980_v29  ;;  %v597_v18 = vsub.f32 %v2131_v14, %v2854_v61  ;;  %v610_v63 = vsub.f32 %v2632_v4, %v2131_v14  ;;  %1743 = vmatprep.subr.mxu0 %v1166_v9  ;;  %v1148_v4 = vld [vmem:[#allocation3 + $0x230] sm:$0xff] }
 0x1c9   :  { %v126_v32 = vmul.f32 %v1859_v49, %v2131_v14  ;;  %v1020_v21 = vmul.f32 %v1012_v2, %v842_v46  ;;  %v547_v11 = vmul.f32 %v530_v39, %v2570_v16  ;;  %v551_v31 = vmul.f32 %v543_v36, %v285_v15  ;;  %1744 = vmatpush3.msra.mxu0 %v1150_v17  ;;  %v1145_v17 = vld [vmem:[#allocation3 + $0x218] sm:$0xff]  ;;  %v3170_v46 = vld [vmem:[#allocation27_spill] sm:$0xff] }
 0x1ca   :  { %v585_v42 = vmul.f32 %v568_v38, %v285_v15  ;;  %v589_v54 = vmul.f32 %v581_v6, %v306_v25  ;;  %v606_v40 = vmul.f32 %v2658_v30, %v597_v18  ;;  %v619_v33 = vmul.f32 %v2668_v26, %v610_v63  ;;  %1745 = vmatprep.subr.mxu0 %v1165_v28  ;;  %v3169_v15 = vld [vmem:[#allocation26_spill] sm:$0xff]  ;;  %v1160_v28 = vld [vmem:[#allocation3 + $0x290] sm:$0xff]  ;;  %v3171_v38 = vld [vmem:[#allocation32_spill] sm:$0xff] }
 0x1cb   :  { %1277 = vmatmul.mubr.f32.gmra.mxu0 %v126_v32  ;;  %v1024_v61 = vadd.f32 %v1020_v21, %v1016_v22  ;;  %v2998_v51 = vadd.f32 %v551_v31, %v547_v11  ;;  %v792_v14 = vmul.f32 %v2673_v50, %v2967_v20  ;;  %v801_v30 = vmul.f32 %v2687_v35, %v2980_v29  ;;  %v1144_v32 = vld [vmem:[#allocation3 + $0x210] sm:$0xff]  ;;  %v1143_v11 = vld [vmem:[#allocation3 + $0x208] sm:$0xff] }
 0x1cc   :  { %1431 = vmatprep.mubr.f32.mxu0 %v2843_v10  ;;  %1746 = vmatpush3.msra.mxu0 %v1149_v1  ;;  %v593_v16 = vadd.f32 %v589_v54, %v585_v42  ;;  %v623_v44 = vmul.f32 %v606_v40, %v306_v25  ;;  %v627_v2 = vmul.f32 %v619_v33, %v327_v5  ;;  %v1162_v10 = vld [vmem:[#allocation3 + $0x2a0] sm:$0xff]  ;;  %v1159_v1 = vld [vmem:[#allocation3 + $0x288] sm:$0xff]  ;;  %v3172_v33 = vld [vmem:[#allocation35_spill] sm:$0xff] }
 0x1cd   :  { %1828 = vmatprep.mubr.f32.mxu1 %v1024_v61  ;;  %1747 = vmatprep.subr.mxu0 %v1164_v57  ;;  %v805_v26 = vmul.f32 %v792_v14, %v2998_v51  ;;  %v822_v24 = vmul.f32 %v2692_v53, %v559_v34  ;;  %v831_v50 = vmul.f32 %v2707_v62, %v610_v63  ;;  %v1872_v53 = vld [vmem:[%s3075_s3 + $0x14] ss:$0 sm:$0xff]  ;;  %v1161_v62 = vld [vmem:[#allocation3 + $0x298] sm:$0xff]  ;;  %v1158_v42 = vld [vmem:[#allocation3 + $0x280] sm:$0xff] }
 0x1ce   :  { %1748 = vmatpush3.msra.mxu0 %v1148_v4  ;;  %v631_v59 = vadd.f32 %v627_v2, %v623_v44  ;;  %v809_v52 = vmul.f32 %v801_v30, %v593_v16  ;;  %v760_v35 = vmul.f32 %v1871_v60, %v3168_v0  ;;  %v769_v9 = vmul.f32 %v1872_v53, %v3169_v15  ;;  %v1142_v4 = vld [vmem:[#allocation3 + $0x200] sm:$0xff]  ;;  %v3173_v14 = vld [vmem:[#allocation22_spill] sm:$0xff]  ;;  %v3174_v30 = vld [vmem:[#allocation36_spill] sm:$0xff] }
 0x1cf   :  { %v835_v13 = vmul.f32 %v822_v24, %v593_v16  ;;  %1749 = vmatprep.subr.mxu0 %v1163_v58  ;;  %v1004_v34 = vmul.f32 %v2712_v23, %v2967_v20  ;;  %v1013_v49 = vmul.f32 %v2717_v43, %v610_v63  ;;  %v761_v6 = vmul.f32 %v1871_v60, %v3171_v38  ;;  %v3175_v24 = vld [vmem:[#allocation29_spill] sm:$0xff] }
 0x1d0   :  { %v839_v22 = vmul.f32 %v831_v50, %v631_v59  ;;  %1750 = vmatpush3.msra.mxu0 %v1147_v45  ;;  %v3016_v25 = vadd.f32 %v809_v52, %v805_v26  ;;  %v773_v5 = vmul.f32 %v760_v35, %v3170_v46  ;;  %v777_v39 = vmul.f32 %v769_v9, %v3167_v56  ;;  %v3178_v9 = vld [vmem:[#allocation33_spill] sm:$0xff]  ;;  %v3179_v46 = vld [vmem:[#allocation34_spill] sm:$0xff] }
 0x1d1   :  { %1751 = vmatprep.subr.mxu0 %v1162_v10  ;;  %v770_v23 = vmul.f32 %v1872_v53, %v2910_v48  ;;  %v972_v56 = vmul.f32 %v2807_v41, %v3168_v0  ;;  %v981_v43 = vmul.f32 %v2812_v37, %v2847_v3  ;;  %v774_v63 = vmul.f32 %v761_v6, %v2507_v27  ;;  %v1873_v3 = vld [vmem:[%s3074_s2 + $0x23] ss:$0 sm:$0xff] }
 0x1d2   :  { %v843_v36 = vadd.f32 %v839_v22, %v835_v13  ;;  %1752 = vmatpush3.msra.mxu0 %v1146_v8  ;;  %v1017_v18 = vmul.f32 %v1004_v34, %v3016_v25  ;;  %v781_v21 = vadd.f32 %v777_v39, %v773_v5  ;;  %v762_v61 = vmul.f32 %v1871_v60, %v3172_v33  ;;  %v3176_v8 = vld [vmem:[#allocation20_spill] sm:$0xff]  ;;  %v3177_v60 = vld [vmem:[#allocation31_spill] sm:$0xff] }
 0x1d3   :  { %1753 = vmatprep.subr.mxu0 %v1161_v62  ;;  %v778_v31 = vmul.f32 %v770_v23, %v2940_v19  ;;  %v989_v40 = vmul.f32 %v981_v43, %v2898_v7  ;;  %v942_v27 = vmul.f32 %v1873_v3, %v3173_v14  ;;  %v1874_v19 = vld [vmem:[%s3075_s3 + $0x23] ss:$0 sm:$0xff]  ;;  %v771_v2 = vmul.f32 %v1872_v53, %v2971_v12 }
 0x1d4   :  { %v1021_v20 = vmul.f32 %v1013_v49, %v843_v36  ;;  %1754 = vmatpush3.msra.mxu0 %v1145_v17  ;;  %v985_v54 = vmul.f32 %v972_v56, %v781_v21  ;;  %v951_v16 = vmul.f32 %v1874_v19, %v3169_v15  ;;  %v973_v7 = vmul.f32 %v2807_v41, %v3171_v38  ;;  %v3180_v36 = vld [vmem:[#allocation37_spill] sm:$0xff] }
 0x1d5   :  { %1755 = vmatprep.subr.mxu0 %v1160_v28  ;;  %v782_v44 = vadd.f32 %v778_v31, %v774_v63  ;;  %v982_v58 = vmul.f32 %v2812_v37, %v2917_v55  ;;  %v775_v26 = vmul.f32 %v762_v61, %v3174_v30  ;;  %v955_v45 = vmul.f32 %v942_v27, %v3175_v24  ;;  %v1640_v31 = vld [vmem:[%s3077_s5] ss:$0 sm:$0xff]  ;;  %s1923_s5 = smov [#allocation6]  }
 0x1d6   :  { %v1025_v57 = vadd.f32 %v1021_v20, %v1017_v18  ;;  %1756 = vmatpush3.msra.mxu0 %v1144_v32  ;;  %v959_v59 = vmul.f32 %v951_v16, %v781_v21  ;;  %v779_v50 = vmul.f32 %v771_v2, %v2998_v51  ;;  %v993_v10 = vadd.f32 %v989_v40, %v985_v54  ;;  %s1546_s23 = sshll.u32 %s1923_s5, 4  ;;  %s1547_s23 = int_to_ptr.vmem [resolvable:$true] %s1546_s23 }
 0x1d7   :  { %1757 = vmatprep.subr.mxu0 %v1159_v1  ;;  %v986_v52 = vmul.f32 %v973_v7, %v782_v44  ;;  %v990_v13 = vmul.f32 %v982_v58, %v2956_v47  ;;  %v943_v0 = vmul.f32 %v1873_v3, %v3177_v60  ;;  %v952_v35 = vmul.f32 %v1874_v19, %v2910_v48  ;;  %s1895_s26 = scalar_lea.vmem %s1547_s23, 512  ;;  %p1900_p6 = scmp.lt.s32.totalorder %s1547_s23, %s1547_s23 }
 0x1d8   :  { %1829 = vmatmul.mubr.f32.gmra.mxu1 %v1025_v57  ;;  %1758 = vmatpush3.msra.mxu0 %v1143_v11  ;;  %v783_v55 = vadd.f32 %v779_v50, %v775_v26  ;;  %v974_v53 = vmul.f32 %v2807_v41, %v3172_v33  ;;  %v983_v15 = vmul.f32 %v2812_v37, %v2980_v29  ;;  %p1896_p5 = scmp.ne.s32.totalorder %s1547_s23, %s1895_s26  ;;  %p1901_p7 = scmp.lt.s32.totalorder %s1895_s26, %s1895_s26 }
 0x1d9   :  { %1759 = vmatprep.subr.mxu0 %v1158_v42  ;;  %v963_v51 = vadd.f32 %v959_v59, %v955_v45  ;;  %v956_v22 = vmul.f32 %v943_v0, %v3178_v9  ;;  %v960_v62 = vmul.f32 %v952_v35, %v782_v44  ;;  %v994_v34 = vadd.f32 %v990_v13, %v986_v52 }
 0x1da   :  { %1760 = vmatpush3.msra.mxu0 %v1142_v4  ;;  %v987_v47 = vmul.f32 %v974_v53, %v783_v55  ;;  %v991_v17 = vmul.f32 %v983_v15, %v3016_v25  ;;  %v944_v5 = vmul.f32 %v1873_v3, %v3179_v46  ;;  %v953_v48 = vmul.f32 %v1874_v19, %v2971_v12  ;;  %p1902_p8 = por %p1901_p7, %p1900_p6 }
 0x1db   :  { %1432 = vmatmul.mubr.f32.vlgmr.msra.gmra.mxu0 %v3176_v8  ;;  %v964_v39 = vadd.f32 %v960_v62, %v956_v22 }
 0x1dc   :  { %1436 = vmatprep.mubr.f32.mxu0 %v993_v10  ;;  %v957_v41 = vmul.f32 %v944_v5, %v3180_v36  ;;  %v961_v49 = vmul.f32 %v953_v48, %v783_v55  ;;  %v995_v28 = vadd.f32 %v991_v17, %v987_v47  ;;  %p1903_p9 = pnand %p1902_p8, %p1896_p5 }
 0x1de   :  { %v965_v37 = vadd.f32 %v961_v49, %v957_v41 }
 0x1df   :  { %1437 = vmatmul.mubr.f32.gmra.mxu0 %v963_v51 }
 0x1e0   :  { %1441 = vmatprep.mubr.f32.mxu0 %v994_v34 }
 0x1e3   :  { %1442 = vmatmul.mubr.f32.gmra.mxu0 %v964_v39 }
 0x1e4   :  { %1446 = vmatprep.mubr.f32.mxu0 %v995_v28 }
 0x1e7   :  { %1447 = vmatmul.mubr.f32.gmra.mxu0 %v965_v37 }
 0x21e   :  { %v1717_v38 = vpop.f32.mrf.mxu1 }
 0x220   :  { %v1718_v18 = vpop.f32.mrf.mxu1 }
 0x221   :  { %v1719_v61 = vadd.f32 %v1718_v18, %v1717_v38 }
 0x23a   :  { %v1720_v32 = vpop.f32.mrf.mxu1 }
 0x23c   :  { %v1721_v23 = vpop.f32.mrf.mxu1 }
 0x23d   :  { %v1722_v44 = vadd.f32 %v1721_v23, %v1720_v32 }
 0x24b   :  { %v1723_v12 = vpop.f32.mrf.mxu1 }
 0x24d   :  { %v1724_v56 = vpop.f32.mrf.mxu1 }
 0x24e   :  { %v1725_v52 = vadd.f32 %v1724_v56, %v1723_v12 }
 0x25c   :  { %v1726_v11 = vpop.f32.mrf.mxu1 }
 0x25e   :  { %v1727_v40 = vpop.f32.mrf.mxu1 }
 0x25f   :  { %v1728_v51 = vadd.f32 %v1727_v40, %v1726_v11 }
 0x27a   :  { %v1673_v29 = vpop.f32.mrf.mxu0 }
 0x27c   :  { %v1674_v6 = vpop.f32.mrf.mxu0 }
 0x27d   :  { %v1675_v63 = vadd.f32 %v1674_v6, %v1673_v29 }
 0x27f   :  { %v1264_v54 = vadd.f32 %v1675_v63, %v1640_v31 }
 0x280   :  { %v1676_v25 = vpop.f32.mrf.mxu0 }
 0x281   :  { %v1349_v19 = vadd.f32 %v1719_v61, %v1264_v54 }
 0x282   :  { %v1677_v21 = vpop.f32.mrf.mxu0  ;;  %v1827_v3 = vpop.f32.mrf.mxu1 }
 0x283   :  { %v1678_v57 = vadd.f32 %v1677_v21, %v1676_v25 }
 0x284   :  { %v1679_v20 = vpop.f32.mrf.mxu0  ;;  %v1518_v58 = vpop.f32.mrf.mxu1 }
 0x285   :  { %v1269_v4 = vadd.f32 %v1678_v57, %v1640_v31 }
 0x286   :  { %v1680_v1 = vpop.f32.mrf.mxu0 }
 0x287   :  { %v1681_v27 = vadd.f32 %v1680_v1, %v1679_v20  ;;  %v1354_v30 = vadd.f32 %v1722_v44, %v1269_v4 }
 0x289   :  { %v1274_v24 = vadd.f32 %v1681_v27, %v1640_v31 }
 0x28b   :  { %v1682_v43 = vpop.f32.mrf.mxu0  ;;  %v1359_v55 = vadd.f32 %v1725_v52, %v1274_v24 }
 0x28d   :  { %v1683_v42 = vpop.f32.mrf.mxu0 }
 0x28e   :  { %v1684_v45 = vadd.f32 %v1683_v42, %v1682_v43 }
 0x290   :  { %v1279_v0 = vadd.f32 %v1684_v45, %v1640_v31 }
 0x292   :  { %v1364_v47 = vadd.f32 %v1728_v51, %v1279_v0 }
 0x298   :  { %v1830_v8 = vpop.f32.mrf.mxu1 }
 0x29a   :  { %v1528_v22 = vpop.f32.mrf.mxu1 }
 0x29b   :  { %v1761_v33 = vpop.f32.mrf.mxu0 }
 0x29d   :  { %v1762_v14 = vpop.f32.mrf.mxu0 }
 0x29e   :  { %v1763_v16 = vadd.f32 %v1762_v14, %v1761_v33 }
 0x29f   :  { %v1764_v2 = vpop.f32.mrf.mxu0 }
 0x2a0   :  { %v1434_v7 = vadd.f32 %v1763_v16, %v1349_v19 }
 0x2a1   :  { %v1765_v26 = vpop.f32.mrf.mxu0 }
 0x2a2   :  { %v1519_v59 = vadd.f32 %v1518_v58, %v1434_v7  ;;  %v1766_v50 = vadd.f32 %v1765_v26, %v1764_v2 }
 0x2a3   :  { %v1767_v10 = vpop.f32.mrf.mxu0 }
 0x2a4   :  { %1537 = vst [vmem:[#allocation6] sm:$0xff] %v1519_v59  ;;  %v1439_v13 = vadd.f32 %v1766_v50, %v1354_v30 }
 0x2a5   :  { %v1768_v60 = vpop.f32.mrf.mxu0 }
 0x2a6   :  { %v1524_v35 = vadd.f32 %v1827_v3, %v1439_v13  ;;  %v1769_v53 = vadd.f32 %v1768_v60, %v1767_v10 }
 0x2a7   :  { %v1770_v15 = vpop.f32.mrf.mxu0 }
 0x2a8   :  { %1538 = vst [vmem:[#allocation6 + $0x8] sm:$0xff] %v1524_v35  ;;  %v1444_v9 = vadd.f32 %v1769_v53, %v1359_v55 }
 0x2a9   :  { %v1771_v62 = vpop.f32.mrf.mxu0 }
 0x2aa   :  { %v1529_v34 = vadd.f32 %v1528_v22, %v1444_v9  ;;  %v1772_v17 = vadd.f32 %v1771_v62, %v1770_v15 }
 0x2ac   :  { %1539 = vst [vmem:[#allocation6 + $0x10] sm:$0xff] %v1529_v34  ;;  %v1449_v46 = vadd.f32 %v1772_v17, %v1364_v47 }
 0x2ae   :  { %v1534_v5 = vadd.f32 %v1830_v8, %v1449_v46 }
 0x2b0   :  { %1540 = vst [vmem:[#allocation6 + $0x18] sm:$0xff] %v1534_v5 }
 0x2b1   :  { %1906 = shalt.err (!%p1903_p9)
}
 0x2b2   :  { %1552 = dma.vmem_to_hbm [thread:$0]  %s1547_s23, 512, %s3078_s6, [#allocation5], %s1920_s24, %s1920_s24, %s1921_s25  }
 0x2b3   :  { %1917 = dma.done.wait [#allocation5], 512  }
 0x2b4   :  { %1918 = vsyncadd [#allocation5], 4294966784 }
 0x2b5   :  { %1556 = vsyncpa [#allocation4], 1 }
 0x2b6   :  { %1557 = vsyncpa [#allocation5], 1 }

</bundles_post_ra>
